<compile_context>
chip_gen: v7x
topology: tpu7x:2x2x1
jax: 0.10.0
libtpu: 0.0.40
codegen_flags: <defaults>
</compile_context>

<pallas_src>
import math

import jax
import jax.numpy as jnp
from jax.experimental import pallas as pl
from jax.experimental.pallas import tpu as pltpu


def _regression_predictor_kernel(hidden_ref, mask_ref, menc_ref,
                                 wm_ref, bm_ref,
                                 w1t_ref, w1m_ref, b1_ref,
                                 w2_ref, b2_ref,
                                 w3_ref, b3_ref,
                                 w4_ref, b4_ref,
                                 out_ref,
                                 acc_emb, acc_cnt):
    s = pl.program_id(1)

    @pl.when(s == 0)
    def _init():
        acc_emb[...] = jnp.zeros_like(acc_emb)
        acc_cnt[...] = jnp.zeros_like(acc_cnt)

    # ---- masked-sum over this sequence tile, on the MXU ----
    # (tb, 1, ts) @ (tb, ts, Ht) -> (tb, 1, Ht); bf16 inputs, f32 accumulation.
    # Same batched-matmul pattern as flash-attention's p @ v, so it lowers
    # cleanly and never materializes a (tb, ts, Ht) f32 temporary.
    m = mask_ref[...]                                          # (tb, 1, ts) bf16
    acc_emb[...] += jnp.einsum("bqs,bsh->bqh", m, hidden_ref[...],
                               preferred_element_type=jnp.float32)
    # Token count must accumulate in f32 (bf16 ints are exact only up to 256).
    acc_cnt[...] += jnp.sum(m.astype(jnp.float32), axis=2, keepdims=True)

    # ---- finalize: mean pooling + MLP head, on the last sequence step ----
    @pl.when(s == pl.num_programs(1) - 1)
    def _finalize():
        # Squeeze the unit "q" axis via a (trivially supported) reduction.
        cnt = jnp.sum(acc_cnt[...], axis=1)                    # (tb, 1)
        # torch.clamp(sum_mask, min=1e-9) then divide (approx recip -> EUP).
        inv = pl.reciprocal(jnp.maximum(cnt, 1e-9), approx=True)
        pooled = jnp.sum(acc_emb[...], axis=1) * inv           # (tb, Ht)

        memb = (jnp.dot(menc_ref[...], wm_ref[...],
                        preferred_element_type=jnp.float32) + bm_ref[...])

        # fc1 over cat([pooled, memb], 1) == pooled @ W1[:Ht] + memb @ W1[Ht:]
        x = (jnp.dot(pooled, w1t_ref[...], preferred_element_type=jnp.float32)
             + jnp.dot(memb, w1m_ref[...], preferred_element_type=jnp.float32)
             + b1_ref[...])
        x = jnp.maximum(x, 0.0)                                # ReLU
        x = jnp.maximum(jnp.dot(x, w2_ref[...], preferred_element_type=jnp.float32)
                        + b2_ref[...], 0.0)
        x = jnp.maximum(jnp.dot(x, w3_ref[...], preferred_element_type=jnp.float32)
                        + b3_ref[...], 0.0)
        out_ref[...] = (jnp.dot(x, w4_ref[...], preferred_element_type=jnp.float32)
                        + b4_ref[...]).astype(out_ref.dtype)   # (tb, 2)


# ----------------------------- tiling helpers --------------------------------

def _round_up(x, m):
    return ((x + m - 1) // m) * m


def _padded_vmem_bytes(shape, dtype):
    """Approximate VMEM bytes of one buffer, with (sublane, lane) tile padding."""
    itemsize = jnp.dtype(dtype).itemsize
    sublane = 8 * max(1, 4 // itemsize)          # 8 (f32) / 16 (bf16) / 32 (int8)
    shape = tuple(shape)
    if len(shape) < 2:
        shape = (1,) * (2 - len(shape)) + shape
    lead = math.prod(shape[:-2])
    return lead * _round_up(shape[-2], sublane) * _round_up(shape[-1], 128) * itemsize


def _vmem_capacity_bytes():
    try:
        cap = getattr(pltpu.get_tpu_info(), "vmem_capacity_bytes", None)
        if cap:
            return int(cap)
    except Exception:
        pass
    return 64 * 2**20            # conservative fallback: v7x per-TensorCore VMEM


def _pick_tb(B, fits):
    """Largest multiple-of-8 divisor of B (<=128) that leaves >= 2 batch blocks
    when possible (so the 'parallel' axis shards across v7x's two cores) and
    passes the VMEM `fits` predicate."""
    cands = [t for t in range(8, min(128, B) + 1, 8) if B % t == 0]
    two_block = [t for t in cands if t <= B // 2]
    ordered = sorted(two_block or cands, reverse=True)
    for t in ordered:
        if fits(t):
            return t
    return ordered[-1] if ordered else B


def _pick_ts(S, per_buf_bytes, bytes_per_seq_row):
    """Largest multiple-of-128 divisor of S whose streamed tile fits one
    pipeline buffer; ideally ts == S so the reduction collapses to one step."""
    if S % 128 != 0:
        return S                 # toy / ragged shapes: one full-extent block
    cap = per_buf_bytes // max(1, bytes_per_seq_row)
    if cap >= S:
        return S
    ts = max(128, (cap // 128) * 128)
    while S % ts != 0:
        ts -= 128
    return ts


# --------------------------------- wrapper ------------------------------------

def regression_predictor(last_hidden_state, attention_mask, model_enc, params,
                         *, tb=None, ts=None, stream_dtype=jnp.bfloat16):
    """Masked mean pooling + model-embedding Linear + 4-layer MLP head in one
    pallas_call.  grid = (batch blocks [parallel], sequence blocks [arbitrary])."""
    B, S, Ht = last_hidden_state.shape
    M = model_enc.shape[-1]
    C = params["b4"].shape[-1]
    isize = jnp.dtype(stream_dtype).itemsize

    hidden = last_hidden_state.astype(stream_dtype)            # streamed bf16
    # (B, 1, S): lane-dense mask in exactly the layout the in-kernel batched
    # matmul wants; 0/1 values are exact in bf16.
    mask3 = attention_mask.astype(stream_dtype).reshape(B, 1, S)
    menc = model_enc.astype(jnp.float32)

    vmem_cap = _vmem_capacity_bytes()
    headroom = 8 * 2**20          # Mosaic internal scratch / small temporaries
    weight_bytes = sum(_padded_vmem_bytes(p.shape, p.dtype) for p in params.values())

    def fixed_bytes(tb_):
        # Weights/biases use constant index_maps; the default pipeline still
        # double-buffers them, so count them twice.  (Single-buffering via
        # pipeline_mode=pl.Buffered(1) would reclaim ~weight_bytes; left out
        # pending confirmed support on the target jax version.)
        return (2 * weight_bytes
                + 2 * _padded_vmem_bytes((tb_, M), jnp.float32)
                + 2 * _padded_vmem_bytes((tb_, C), jnp.float32)
                + _padded_vmem_bytes((tb_, 1, Ht), jnp.float32)
                + _padded_vmem_bytes((tb_, 1, 1), jnp.float32))

    min_ts = S if S % 128 != 0 else min(S, 128)

    def fits(tb_):
        return (2 * tb_ * min_ts * (Ht + 16) * isize
                <= vmem_cap - fixed_bytes(tb_) - headroom)

    if tb is None:
        tb = _pick_tb(B, fits)
    assert B % tb == 0, (B, tb)

    if ts is None:
        stream_budget = max(2 * 2**20, vmem_cap - fixed_bytes(tb) - headroom)
        per_buf = min(stream_budget // 2, 48 * 2**20)   # per-buffer cap (v5e/v6e)
        ts = _pick_ts(S, per_buf, tb * (Ht + 16) * isize)
    assert S % ts == 0, (S, ts)
    grid = (B // tb, S // ts)

    # Accurate VMEM footprint (tile-padded) + headroom; no 2x fudge factor.
    est = (fixed_bytes(tb)
           + 2 * _padded_vmem_bytes((tb, ts, Ht), stream_dtype)
           + 2 * _padded_vmem_bytes((tb, 1, ts), stream_dtype))
    vmem_limit = int(min(vmem_cap, max(16 * 2**20, est + headroom)))

    const = lambda b, s: (0, 0)      # weights/biases: VMEM-resident across the grid
    grid_spec = pltpu.PrefetchScalarGridSpec(
        num_scalar_prefetch=0,
        grid=grid,
        in_specs=[
            pl.BlockSpec((tb, ts, Ht), lambda b, s: (b, s, 0)),   # hidden (stream)
            pl.BlockSpec((tb, 1, ts), lambda b, s: (b, 0, s)),    # mask   (stream)
            pl.BlockSpec((tb, M), lambda b, s: (b, 0)),           # model_enc
            pl.BlockSpec(params["wm"].shape, const),
            pl.BlockSpec(params["bm"].shape, const),
            pl.BlockSpec(params["w1_text"].shape, const),
            pl.BlockSpec(params["w1_model"].shape, const),
            pl.BlockSpec(params["b1"].shape, const),
            pl.BlockSpec(params["w2"].shape, const),
            pl.BlockSpec(params["b2"].shape, const),
            pl.BlockSpec(params["w3"].shape, const),
            pl.BlockSpec(params["b3"].shape, const),
            pl.BlockSpec(params["w4"].shape, const),
            pl.BlockSpec(params["b4"].shape, const),
        ],
        out_specs=pl.BlockSpec((tb, C), lambda b, s: (b, 0)),
        scratch_shapes=[pltpu.VMEM((tb, 1, Ht), jnp.float32),     # pooled-sum acc
                        pltpu.VMEM((tb, 1, 1), jnp.float32)],     # mask-count acc
    )

    return pl.pallas_call(
        _regression_predictor_kernel,
        out_shape=jax.ShapeDtypeStruct((B, C), jnp.float32),
        grid_spec=grid_spec,
        compiler_params=pltpu.CompilerParams(
            dimension_semantics=("parallel", "arbitrary"),
            vmem_limit_bytes=vmem_limit),
    )(hidden, mask3, menc,
      params["wm"], params["bm"],
      params["w1_text"], params["w1_model"], params["b1"],
      params["w2"], params["b2"],
      params["w3"], params["b3"],
      params["w4"], params["b4"])


def init_params(key, text_embedding_size, num_models, num_outputs=2,
                hidden_size=256, model_emb_dim=32):
    """nn.Linear-style init U(-1/sqrt(fan_in), 1/sqrt(fan_in)); weights stored
    transposed vs. PyTorch, i.e. (in_features, out_features)."""
    ks = jax.random.split(key, 10)

    def lin(kw, kb, fan_in, fan_out):
        bound = 1.0 / math.sqrt(fan_in)
        w = jax.random.uniform(kw, (fan_in, fan_out), jnp.float32, -bound, bound)
        b = jax.random.uniform(kb, (1, fan_out), jnp.float32, -bound, bound)
        return w, b

    wm, bm = lin(ks[0], ks[1], num_models, model_emb_dim)
    w1, b1 = lin(ks[2], ks[3], text_embedding_size + model_emb_dim, hidden_size)
    w2, b2 = lin(ks[4], ks[5], hidden_size, hidden_size)
    w3, b3 = lin(ks[6], ks[7], hidden_size, hidden_size)
    w4, b4 = lin(ks[8], ks[9], hidden_size, num_outputs)
    return {
        "wm": wm, "bm": bm,                              # (M, E), (1, E)
        "w1_text": w1[:text_embedding_size],             # (Ht, H)
        "w1_model": w1[text_embedding_size:],            # (E, H)
        "b1": b1,                                        # (1, H)
        "w2": w2, "b2": b2,                              # (H, H), (1, H)
        "w3": w3, "b3": b3,                              # (H, H), (1, H)
        "w4": w4, "b4": b4,                              # (H, 2), (1, 2)
    }


if __name__ == "__main__":
    # Small shapes consistent with the module's forward (Ht stands in for 1024).
    B, S = 16, 256
    Ht = 128
    num_models = 8
    model_emb_dim = 32
    hidden_size = 128
    vocab = 1000

    key = jax.random.PRNGKey(0)
    k_emb, k_ids, k_mask, k_menc, k_params = jax.random.split(key, 5)

    # Synthetic "encoder": deterministic token-embedding lookup -> last_hidden_state.
    emb_table = jax.random.normal(k_emb, (vocab, Ht), jnp.float32)
    input_ids = jax.random.randint(k_ids, (B, S), 0, vocab)
    attention_mask = (jax.random.uniform(k_mask, (B, S)) > 0.3).astype(jnp.int32)
    attention_mask = attention_mask.at[:, 0].set(1)       # >=1 valid token per row
    last_hidden_state = emb_table[input_ids]              # (B, S, Ht)

    model_enc = jax.random.normal(k_menc, (B, num_models), jnp.float32)
    params = init_params(k_params, Ht, num_models, num_outputs=2,
                         hidden_size=hidden_size, model_emb_dim=model_emb_dim)

    # Pure-JAX reference on the same bf16-rounded hidden state the kernel streams.
    h_ref = last_hidden_state.astype(jnp.bfloat16).astype(jnp.float32)
    mask_f = attention_mask.astype(jnp.float32)[..., None]
    pooled = (h_ref * mask_f).sum(1) / jnp.maximum(mask_f.sum(1), 1e-9)
    memb = model_enc @ params["wm"] + params["bm"]
    x = jnp.maximum(pooled @ params["w1_text"] + memb @ params["w1_model"]
                    + params["b1"], 0.0)
    x = jnp.maximum(x @ params["w2"] + params["b2"], 0.0)
    x = jnp.maximum(x @ params["w3"] + params["b3"], 0.0)
    logits_ref = x @ params["w4"] + params["b4"]

    # (a) forced small tiles: grid (2, 2) exercises the multi-step accumulate +
    #     pl.when finalize path and >= 2 batch blocks for megacore sharding.
    logits = regression_predictor(last_hidden_state, attention_mask, model_enc,
                                  params, tb=8, ts=128)
    jax.block_until_ready(logits)
    assert jnp.allclose(logits, logits_ref, atol=2e-3, rtol=2e-3), (
        "max abs diff = %s" % jnp.max(jnp.abs(logits - logits_ref)))

    # (b) default generation-aware tiling (collapses to ts == S at these shapes).
    logits2 = regression_predictor(last_hidden_state, attention_mask, model_enc,
                                   params)
    jax.block_until_ready(logits2)
    assert jnp.allclose(logits2, logits_ref, atol=2e-3, rtol=2e-3), (
        "max abs diff = %s" % jnp.max(jnp.abs(logits2 - logits_ref)))

    print("KERNEL_OK")
</pallas_src>

<mosaic_0001>
module attributes {stable_mosaic.version = 11 : i64} {
  func.func @_regression_predictor_kernel(%arg0: i32, %arg1: i32, %arg2: memref<8x128x128xbf16, #tpu.memory_space<vmem>>, %arg3: memref<8x1x128xbf16, #tpu.memory_space<vmem>>, %arg4: memref<8x8xf32, #tpu.memory_space<vmem>>, %arg5: memref<8x32xf32, #tpu.memory_space<vmem>>, %arg6: memref<1x32xf32, #tpu.memory_space<vmem>>, %arg7: memref<128x128xf32, #tpu.memory_space<vmem>>, %arg8: memref<32x128xf32, #tpu.memory_space<vmem>>, %arg9: memref<1x128xf32, #tpu.memory_space<vmem>>, %arg10: memref<128x128xf32, #tpu.memory_space<vmem>>, %arg11: memref<1x128xf32, #tpu.memory_space<vmem>>, %arg12: memref<128x128xf32, #tpu.memory_space<vmem>>, %arg13: memref<1x128xf32, #tpu.memory_space<vmem>>, %arg14: memref<128x2xf32, #tpu.memory_space<vmem>>, %arg15: memref<1x2xf32, #tpu.memory_space<vmem>>, %arg16: memref<8x2xf32, #tpu.memory_space<vmem>>, %arg17: memref<8x1x128xf32, #tpu.memory_space<vmem>>, %arg18: memref<8x1x1xf32, #tpu.memory_space<vmem>>) attributes {dimension_semantics = [#tpu.dimension_semantics<parallel>, #tpu.dimension_semantics<arbitrary>], iteration_bounds = array<i64: 2, 2>, scalar_prefetch = 0 : i64, scratch_operands = 2 : i64, tpu.core_type = #tpu.core_type<tc>, window_params = [{transform_indices = @transform_0, window_bounds = array<i64: 8, 128, 128>}, {transform_indices = @transform_1, window_bounds = array<i64: 8, 1, 128>}, {transform_indices = @transform_2, window_bounds = array<i64: 8, 8>}, {pipeline_mode = #tpu.pipeline_mode<synchronous>, transform_indices = @transform_3, window_bounds = array<i64: 8, 32>}, {pipeline_mode = #tpu.pipeline_mode<synchronous>, transform_indices = @transform_4, window_bounds = array<i64: 1, 32>}, {pipeline_mode = #tpu.pipeline_mode<synchronous>, transform_indices = @transform_5, window_bounds = array<i64: 128, 128>}, {pipeline_mode = #tpu.pipeline_mode<synchronous>, transform_indices = @transform_6, window_bounds = array<i64: 32, 128>}, {pipeline_mode = #tpu.pipeline_mode<synchronous>, transform_indices = @transform_7, window_bounds = array<i64: 1, 128>}, {pipeline_mode = #tpu.pipeline_mode<synchronous>, transform_indices = @transform_8, window_bounds = array<i64: 128, 128>}, {pipeline_mode = #tpu.pipeline_mode<synchronous>, transform_indices = @transform_9, window_bounds = array<i64: 1, 128>}, {pipeline_mode = #tpu.pipeline_mode<synchronous>, transform_indices = @transform_10, window_bounds = array<i64: 128, 128>}, {pipeline_mode = #tpu.pipeline_mode<synchronous>, transform_indices = @transform_11, window_bounds = array<i64: 1, 128>}, {pipeline_mode = #tpu.pipeline_mode<synchronous>, transform_indices = @transform_12, window_bounds = array<i64: 128, 2>}, {pipeline_mode = #tpu.pipeline_mode<synchronous>, transform_indices = @transform_13, window_bounds = array<i64: 1, 2>}, {transform_indices = @transform_14, window_bounds = array<i64: 8, 2>}]} {
    %c0_i32 = arith.constant 0 : i32
    %0 = arith.cmpi eq, %arg1, %c0_i32 : i32
    %1 = arith.extui %0 : i1 to i32
    %c0_i32_0 = arith.constant 0 : i32
    %2 = arith.cmpi ne, %1, %c0_i32_0 : i32
    scf.if %2 {
      %cst_20 = arith.constant 0.000000e+00 : f32
      %18 = vector.broadcast %cst_20 : f32 to vector<8x1x128xf32>
      %c0_21 = arith.constant 0 : index
      %c0_22 = arith.constant 0 : index
      %c0_23 = arith.constant 0 : index
      %19 = vector.load %arg17[%c0_21, %c0_22, %c0_23] : memref<8x1x128xf32, #tpu.memory_space<vmem>>, vector<8x1x128xf32>
      tpu.vector_store %arg17[%c0_21, %c0_22, %c0_23], %18 {strides = array<i32>} : memref<8x1x128xf32, #tpu.memory_space<vmem>>, vector<8x1x128xf32>,
      %cst_24 = arith.constant 0.000000e+00 : f32
      %20 = vector.broadcast %cst_24 : f32 to vector<8x1x1xf32>
      %c0_25 = arith.constant 0 : index
      %c0_26 = arith.constant 0 : index
      %c0_27 = arith.constant 0 : index
      %21 = vector.load %arg18[%c0_25, %c0_26, %c0_27] : memref<8x1x1xf32, #tpu.memory_space<vmem>>, vector<8x1x1xf32>
      tpu.vector_store %arg18[%c0_25, %c0_26, %c0_27], %20 {strides = array<i32>} : memref<8x1x1xf32, #tpu.memory_space<vmem>>, vector<8x1x1xf32>,
    } else {
    }
    %c0 = arith.constant 0 : index
    %c0_1 = arith.constant 0 : index
    %c0_2 = arith.constant 0 : index
    %3 = vector.load %arg3[%c0, %c0_1, %c0_2] : memref<8x1x128xbf16, #tpu.memory_space<vmem>>, vector<8x1x128xbf16>
    %c0_3 = arith.constant 0 : index
    %c0_4 = arith.constant 0 : index
    %c0_5 = arith.constant 0 : index
    %4 = vector.load %arg17[%c0_3, %c0_4, %c0_5] : memref<8x1x128xf32, #tpu.memory_space<vmem>>, vector<8x1x128xf32>
    %c0_6 = arith.constant 0 : index
    %c0_7 = arith.constant 0 : index
    %c0_8 = arith.constant 0 : index
    %5 = vector.load %arg2[%c0_6, %c0_7, %c0_8] : memref<8x128x128xbf16, #tpu.memory_space<vmem>>, vector<8x128x128xbf16>
    "tpu.trace_start"() <{level = 10 : i32, message = "bqs,bsh->bqh"}> : () -> ()
    %cst = arith.constant dense<0.000000e+00> : vector<8x1x128xf32>
    %6 = tpu.matmul %3, %5, %cst {dimension_numbers = #tpu.dot_dimension_numbers<[2], [1], [1], [2], [0, 0, 0, 1, 1, 2], [0], [0]>} : vector<8x1x128xbf16>, vector<8x128x128xbf16>, vector<8x1x128xf32> -> vector<8x1x128xf32>
    "tpu.trace_stop"() : () -> ()
    %7 = arith.addf %4, %6 : vector<8x1x128xf32>
    %c0_9 = arith.constant 0 : index
    %c0_10 = arith.constant 0 : index
    %c0_11 = arith.constant 0 : index
    %8 = vector.load %arg17[%c0_9, %c0_10, %c0_11] : memref<8x1x128xf32, #tpu.memory_space<vmem>>, vector<8x1x128xf32>
    tpu.vector_store %arg17[%c0_9, %c0_10, %c0_11], %7 {strides = array<i32>} : memref<8x1x128xf32, #tpu.memory_space<vmem>>, vector<8x1x128xf32>,
    %c0_12 = arith.constant 0 : index
    %c0_13 = arith.constant 0 : index
    %c0_14 = arith.constant 0 : index
    %9 = vector.load %arg18[%c0_12, %c0_13, %c0_14] : memref<8x1x1xf32, #tpu.memory_space<vmem>>, vector<8x1x1xf32>
    %10 = arith.extf %3 : vector<8x1x128xbf16> to vector<8x1x128xf32>
    %cst_15 = arith.constant dense<0.000000e+00> : vector<8x1xf32>
    %11 = vector.multi_reduction <add>, %10, %cst_15 [2] : vector<8x1x128xf32> to vector<8x1xf32>
    %12 = vector.shape_cast %11 : vector<8x1xf32> to vector<8x1x1xf32>
    %13 = arith.addf %9, %12 : vector<8x1x1xf32>
    %c0_16 = arith.constant 0 : index
    %c0_17 = arith.constant 0 : index
    %c0_18 = arith.constant 0 : index
    %14 = vector.load %arg18[%c0_16, %c0_17, %c0_18] : memref<8x1x1xf32, #tpu.memory_space<vmem>>, vector<8x1x1xf32>
    tpu.vector_store %arg18[%c0_16, %c0_17, %c0_18], %13 {strides = array<i32>} : memref<8x1x1xf32, #tpu.memory_space<vmem>>, vector<8x1x1xf32>,
    %c1_i32 = arith.constant 1 : i32
    %15 = arith.cmpi eq, %arg1, %c1_i32 : i32
    %16 = arith.extui %15 : i1 to i32
    %c0_i32_19 = arith.constant 0 : i32
    %17 = arith.cmpi ne, %16, %c0_i32_19 : i32
    scf.if %17 {
      %c0_20 = arith.constant 0 : index
      %c0_21 = arith.constant 0 : index
      %c0_22 = arith.constant 0 : index
      %18 = vector.load %arg18[%c0_20, %c0_21, %c0_22] : memref<8x1x1xf32, #tpu.memory_space<vmem>>, vector<8x1x1xf32>
      %cst_23 = arith.constant dense<0.000000e+00> : vector<8x1xf32>
      %19 = vector.multi_reduction <add>, %18, %cst_23 [1] : vector<8x1x1xf32> to vector<8x1xf32>
      %cst_24 = arith.constant 9.99999971E-10 : f32
      %20 = vector.broadcast %cst_24 : f32 to vector<8x1xf32>
      %21 = arith.maximumf %19, %20 : vector<8x1xf32>
      %22 = tpu.reciprocal %21 {approx = true} : vector<8x1xf32> -> vector<8x1xf32>
      %c0_25 = arith.constant 0 : index
      %c0_26 = arith.constant 0 : index
      %c0_27 = arith.constant 0 : index
      %23 = vector.load %arg17[%c0_25, %c0_26, %c0_27] : memref<8x1x128xf32, #tpu.memory_space<vmem>>, vector<8x1x128xf32>
      %cst_28 = arith.constant dense<0.000000e+00> : vector<8x128xf32>
      %24 = vector.multi_reduction <add>, %23, %cst_28 [1] : vector<8x1x128xf32> to vector<8x128xf32>
      %25 = vector.broadcast %22 : vector<8x1xf32> to vector<8x128xf32>
      %26 = arith.mulf %24, %25 : vector<8x128xf32>
      %c0_29 = arith.constant 0 : index
      %c0_30 = arith.constant 0 : index
      %27 = vector.load %arg4[%c0_29, %c0_30] : memref<8x8xf32, #tpu.memory_space<vmem>>, vector<8x8xf32>
      %c0_31 = arith.constant 0 : index
      %c0_32 = arith.constant 0 : index
      %28 = vector.load %arg5[%c0_31, %c0_32] : memref<8x32xf32, #tpu.memory_space<vmem>>, vector<8x32xf32>
      %cst_33 = arith.constant dense<0.000000e+00> : vector<8x32xf32>
      %29 = tpu.matmul %27, %28, %cst_33 {dimension_numbers = #tpu.dot_dimension_numbers<[1], [0], [0], [1], [0, 0, 1, 1], [], []>} : vector<8x8xf32>, vector<8x32xf32>, vector<8x32xf32> -> vector<8x32xf32>
      %c0_34 = arith.constant 0 : index
      %c0_35 = arith.constant 0 : index
      %30 = vector.load %arg6[%c0_34, %c0_35] : memref<1x32xf32, #tpu.memory_space<vmem>>, vector<1x32xf32>
      %31 = vector.broadcast %30 : vector<1x32xf32> to vector<8x32xf32>
      %32 = arith.addf %29, %31 : vector<8x32xf32>
      %c0_36 = arith.constant 0 : index
      %c0_37 = arith.constant 0 : index
      %33 = vector.load %arg7[%c0_36, %c0_37] : memref<128x128xf32, #tpu.memory_space<vmem>>, vector<128x128xf32>
      %cst_38 = arith.constant dense<0.000000e+00> : vector<8x128xf32>
      %34 = tpu.matmul %26, %33, %cst_38 {dimension_numbers = #tpu.dot_dimension_numbers<[1], [0], [0], [1], [0, 0, 1, 1], [], []>} : vector<8x128xf32>, vector<128x128xf32>, vector<8x128xf32> -> vector<8x128xf32>
      %c0_39 = arith.constant 0 : index
      %c0_40 = arith.constant 0 : index
      %35 = vector.load %arg8[%c0_39, %c0_40] : memref<32x128xf32, #tpu.memory_space<vmem>>, vector<32x128xf32>
      %cst_41 = arith.constant dense<0.000000e+00> : vector<8x128xf32>
      %36 = tpu.matmul %32, %35, %cst_41 {dimension_numbers = #tpu.dot_dimension_numbers<[1], [0], [0], [1], [0, 0, 1, 1], [], []>} : vector<8x32xf32>, vector<32x128xf32>, vector<8x128xf32> -> vector<8x128xf32>
      %37 = arith.addf %34, %36 : vector<8x128xf32>
      %c0_42 = arith.constant 0 : index
      %c0_43 = arith.constant 0 : index
      %38 = vector.load %arg9[%c0_42, %c0_43] : memref<1x128xf32, #tpu.memory_space<vmem>>, vector<1x128xf32>
      %39 = vector.broadcast %38 : vector<1x128xf32> to vector<8x128xf32>
      %40 = arith.addf %37, %39 : vector<8x128xf32>
      %cst_44 = arith.constant 0.000000e+00 : f32
      %41 = vector.broadcast %cst_44 : f32 to vector<8x128xf32>
      %42 = arith.maximumf %40, %41 : vector<8x128xf32>
      %c0_45 = arith.constant 0 : index
      %c0_46 = arith.constant 0 : index
      %43 = vector.load %arg10[%c0_45, %c0_46] : memref<128x128xf32, #tpu.memory_space<vmem>>, vector<128x128xf32>
      %cst_47 = arith.constant dense<0.000000e+00> : vector<8x128xf32>
      %44 = tpu.matmul %42, %43, %cst_47 {dimension_numbers = #tpu.dot_dimension_numbers<[1], [0], [0], [1], [0, 0, 1, 1], [], []>} : vector<8x128xf32>, vector<128x128xf32>, vector<8x128xf32> -> vector<8x128xf32>
      %c0_48 = arith.constant 0 : index
      %c0_49 = arith.constant 0 : index
      %45 = vector.load %arg11[%c0_48, %c0_49] : memref<1x128xf32, #tpu.memory_space<vmem>>, vector<1x128xf32>
      %46 = vector.broadcast %45 : vector<1x128xf32> to vector<8x128xf32>
      %47 = arith.addf %44, %46 : vector<8x128xf32>
      %cst_50 = arith.constant 0.000000e+00 : f32
      %48 = vector.broadcast %cst_50 : f32 to vector<8x128xf32>
      %49 = arith.maximumf %47, %48 : vector<8x128xf32>
      %c0_51 = arith.constant 0 : index
      %c0_52 = arith.constant 0 : index
      %50 = vector.load %arg12[%c0_51, %c0_52] : memref<128x128xf32, #tpu.memory_space<vmem>>, vector<128x128xf32>
      %cst_53 = arith.constant dense<0.000000e+00> : vector<8x128xf32>
      %51 = tpu.matmul %49, %50, %cst_53 {dimension_numbers = #tpu.dot_dimension_numbers<[1], [0], [0], [1], [0, 0, 1, 1], [], []>} : vector<8x128xf32>, vector<128x128xf32>, vector<8x128xf32> -> vector<8x128xf32>
      %c0_54 = arith.constant 0 : index
      %c0_55 = arith.constant 0 : index
      %52 = vector.load %arg13[%c0_54, %c0_55] : memref<1x128xf32, #tpu.memory_space<vmem>>, vector<1x128xf32>
      %53 = vector.broadcast %52 : vector<1x128xf32> to vector<8x128xf32>
      %54 = arith.addf %51, %53 : vector<8x128xf32>
      %cst_56 = arith.constant 0.000000e+00 : f32
      %55 = vector.broadcast %cst_56 : f32 to vector<8x128xf32>
      %56 = arith.maximumf %54, %55 : vector<8x128xf32>
      %c0_57 = arith.constant 0 : index
      %c0_58 = arith.constant 0 : index
      %57 = vector.load %arg14[%c0_57, %c0_58] : memref<128x2xf32, #tpu.memory_space<vmem>>, vector<128x2xf32>
      %cst_59 = arith.constant dense<0.000000e+00> : vector<8x2xf32>
      %58 = tpu.matmul %56, %57, %cst_59 {dimension_numbers = #tpu.dot_dimension_numbers<[1], [0], [0], [1], [0, 0, 1, 1], [], []>} : vector<8x128xf32>, vector<128x2xf32>, vector<8x2xf32> -> vector<8x2xf32>
      %c0_60 = arith.constant 0 : index
      %c0_61 = arith.constant 0 : index
      %59 = vector.load %arg15[%c0_60, %c0_61] : memref<1x2xf32, #tpu.memory_space<vmem>>, vector<1x2xf32>
      %60 = vector.broadcast %59 : vector<1x2xf32> to vector<8x2xf32>
      %61 = arith.addf %58, %60 : vector<8x2xf32>
      %c0_62 = arith.constant 0 : index
      %c0_63 = arith.constant 0 : index
      %62 = vector.load %arg16[%c0_62, %c0_63] : memref<8x2xf32, #tpu.memory_space<vmem>>, vector<8x2xf32>
      tpu.vector_store %arg16[%c0_62, %c0_63], %61 {strides = array<i32>} : memref<8x2xf32, #tpu.memory_space<vmem>>, vector<8x2xf32>,
    } else {
    }
    return
  }
  func.func @transform_0(%arg0: i32, %arg1: i32) -> (i32, i32, i32) {
    %c0_i32 = arith.constant 0 : i32
    %c0_i32_0 = arith.constant 0 : i32
    return %arg0, %arg1, %c0_i32 : i32, i32, i32
  }
  func.func @transform_1(%arg0: i32, %arg1: i32) -> (i32, i32, i32) {
    %c0_i32 = arith.constant 0 : i32
    %c0_i32_0 = arith.constant 0 : i32
    return %arg0, %c0_i32, %arg1 : i32, i32, i32
  }
  func.func @transform_2(%arg0: i32, %arg1: i32) -> (i32, i32) {
    %c0_i32 = arith.constant 0 : i32
    %c0_i32_0 = arith.constant 0 : i32
    return %arg0, %c0_i32 : i32, i32
  }
  func.func @transform_3(%arg0: i32, %arg1: i32) -> (i32, i32) {
    %c0_i32 = arith.constant 0 : i32
    %c0_i32_0 = arith.constant 0 : i32
    %c0_i32_1 = arith.constant 0 : i32
    return %c0_i32, %c0_i32_0 : i32, i32
  }
  func.func @transform_4(%arg0: i32, %arg1: i32) -> (i32, i32) {
    %c0_i32 = arith.constant 0 : i32
    %c0_i32_0 = arith.constant 0 : i32
    %c0_i32_1 = arith.constant 0 : i32
    return %c0_i32, %c0_i32_0 : i32, i32
  }
  func.func @transform_5(%arg0: i32, %arg1: i32) -> (i32, i32) {
    %c0_i32 = arith.constant 0 : i32
    %c0_i32_0 = arith.constant 0 : i32
    %c0_i32_1 = arith.constant 0 : i32
    return %c0_i32, %c0_i32_0 : i32, i32
  }
  func.func @transform_6(%arg0: i32, %arg1: i32) -> (i32, i32) {
    %c0_i32 = arith.constant 0 : i32
    %c0_i32_0 = arith.constant 0 : i32
    %c0_i32_1 = arith.constant 0 : i32
    return %c0_i32, %c0_i32_0 : i32, i32
  }
  func.func @transform_7(%arg0: i32, %arg1: i32) -> (i32, i32) {
    %c0_i32 = arith.constant 0 : i32
    %c0_i32_0 = arith.constant 0 : i32
    %c0_i32_1 = arith.constant 0 : i32
    return %c0_i32, %c0_i32_0 : i32, i32
  }
  func.func @transform_8(%arg0: i32, %arg1: i32) -> (i32, i32) {
    %c0_i32 = arith.constant 0 : i32
    %c0_i32_0 = arith.constant 0 : i32
    %c0_i32_1 = arith.constant 0 : i32
    return %c0_i32, %c0_i32_0 : i32, i32
  }
  func.func @transform_9(%arg0: i32, %arg1: i32) -> (i32, i32) {
    %c0_i32 = arith.constant 0 : i32
    %c0_i32_0 = arith.constant 0 : i32
    %c0_i32_1 = arith.constant 0 : i32
    return %c0_i32, %c0_i32_0 : i32, i32
  }
  func.func @transform_10(%arg0: i32, %arg1: i32) -> (i32, i32) {
    %c0_i32 = arith.constant 0 : i32
    %c0_i32_0 = arith.constant 0 : i32
    %c0_i32_1 = arith.constant 0 : i32
    return %c0_i32, %c0_i32_0 : i32, i32
  }
  func.func @transform_11(%arg0: i32, %arg1: i32) -> (i32, i32) {
    %c0_i32 = arith.constant 0 : i32
    %c0_i32_0 = arith.constant 0 : i32
    %c0_i32_1 = arith.constant 0 : i32
    return %c0_i32, %c0_i32_0 : i32, i32
  }
  func.func @transform_12(%arg0: i32, %arg1: i32) -> (i32, i32) {
    %c0_i32 = arith.constant 0 : i32
    %c0_i32_0 = arith.constant 0 : i32
    %c0_i32_1 = arith.constant 0 : i32
    return %c0_i32, %c0_i32_0 : i32, i32
  }
  func.func @transform_13(%arg0: i32, %arg1: i32) -> (i32, i32) {
    %c0_i32 = arith.constant 0 : i32
    %c0_i32_0 = arith.constant 0 : i32
    %c0_i32_1 = arith.constant 0 : i32
    return %c0_i32, %c0_i32_0 : i32, i32
  }
  func.func @transform_14(%arg0: i32, %arg1: i32) -> (i32, i32) {
    %c0_i32 = arith.constant 0 : i32
    %c0_i32_0 = arith.constant 0 : i32
    return %arg0, %c0_i32 : i32, i32
  }
}

</mosaic_0001>

<bundles_post_ra>
// kernel: tpu_custom_call.1
= control target key start
LH: loop header
LB: loop body
LE: loop exit
PB: predicated region body
PF: predicated region fallthrough
CT: control target
= control target key end

     0   :  { %s4148_s0 = inlined_call_operand.hbm [shape: bf16[16,256,128], index: 0, kind: input, shape index: {}]   ;;  %s4149_s1 = inlined_call_operand.vmem [shape: bf16[16,1,256], index: 1, kind: input, shape index: {}]   ;;  %s4150_s2 = inlined_call_operand.vmem [shape: f32[16,8], index: 2, kind: input, shape index: {}]   ;;  %s4151_s3 = inlined_call_operand.vmem [shape: f32[8,32], index: 3, kind: input, shape index: {}]   ;;  %s4152_s4 = inlined_call_operand.vmem [shape: f32[1,32], index: 4, kind: input, shape index: {}]   ;;  %s4153_s5 = inlined_call_operand.vmem [shape: f32[128,128], index: 5, kind: input, shape index: {}]   ;;  %s4154_s6 = inlined_call_operand.vmem [shape: f32[32,128], index: 6, kind: input, shape index: {}]   ;;  %s4155_s7 = inlined_call_operand.vmem [shape: f32[1,128], index: 7, kind: input, shape index: {}]   ;;  %s4156_s8 = inlined_call_operand.hbm [shape: f32[128,128], index: 8, kind: input, shape index: {}]   ;;  %s4157_s9 = inlined_call_operand.vmem [shape: f32[1,128], index: 9, kind: input, shape index: {}]   ;;  %s4158_s10 = inlined_call_operand.hbm [shape: f32[128,128], index: 10, kind: input, shape index: {}]   ;;  %s4159_s11 = inlined_call_operand.vmem [shape: f32[1,128], index: 11, kind: input, shape index: {}]   ;;  %s4160_s12 = inlined_call_operand.vmem [shape: f32[128,2], index: 12, kind: input, shape index: {}]   ;;  %s4161_s13 = inlined_call_operand.vmem [shape: f32[1,2], index: 13, kind: input, shape index: {}]   ;;  %s4162_s14 = inlined_call_operand.vmem [shape: f32[16,2], index: 14, kind: output, shape index: {}]  }
   0x1   :  { %4173 = sst [smem:[#allocation18_spill]] %s4148_s0 }
   0x2   :  { %4174 = sst [smem:[#allocation19_spill]] %s4151_s3 }
   0x3   :  { %4175 = sst [smem:[#allocation20_spill]] %s4152_s4 }
   0x4   :  { %4176 = sst [smem:[#allocation21_spill]] %s4153_s5 }
   0x5   :  { %4177 = sst [smem:[#allocation22_spill]] %s4154_s6 }
   0x6   :  { %4178 = sst [smem:[#allocation23_spill]] %s4155_s7 }
   0x7   :  { %4179 = sst [smem:[#allocation24_spill]] %s4157_s9 }
   0x8   :  { %4180 = sst [smem:[#allocation25_spill]] %s4159_s11 }
   0x9   :  { %4181 = sst [smem:[#allocation26_spill]] %s4160_s12 }
   0xa   :  { %4182 = sst [smem:[#allocation27_spill]] %s4161_s13 }
   0xb   :  { %19 = vsyncpa [#allocation5], 0 }
   0xc   :  { %21 = vsyncpa [#allocation5 + $0x1], 0 }
   0xd   :  { %22 = vsyncpa [#allocation8], 0  ;;  %s3550_s29 = smov 0   ;;  %s3552_s30 = smov 0  }
   0xe   :  { %s3554_s15 = smov 0   ;;  %s3556_s16 = smov 0  }
   0xf   :  { %s3558_s17 = smov 0   ;;  %s3560_s18 = smov 0  }
  0x10   :  { %s3562_s19 = smov 0   ;;  %s3564_s20 = smov 0  }
  0x11 LB: > { %s2472_s21 = sadd.s32 4294967295, %s3455_s20   ;;  %s37_s22 = sadd.s32 1, %s3447_s18  ;;  %s3455_s20 = sphi %s3564_s20, %s28_s20   ;;  %s3451_s19 = sphi %s3562_s19, %s4214_s19   ;;  %s3447_s18 = sphi %s3560_s18, %s4213_s18   ;;  %s3443_s17 = sphi %s3558_s17, %s4212_s17   ;;  %s3439_s16 = sphi %s3556_s16, %s4211_s16   ;;  %s3435_s15 = sphi %s3554_s15, %s4210_s15   ;;  %s3431_s30 = sphi %s3552_s30, %s4209_s30   ;;  %s3427_s29 = sphi %s3550_s29, %s4208_s29  }
  0x12   : > { %p38_p0 = scmp.ge.s32.totalorder %s37_s22, 2  ;;  %s40_s23 = sadd.s32 1, %s3451_s19 }
  0x13   : > { %s49_s24 = sadd.s32 1, %s3435_s15  ;;  %p56_p1 = scmp.ne.s32.totalorder %s3435_s15, %s3431_s30 }
  0x14   : > { %s4216_s22 = smov (%p38_p0, %s37_s22), 0  ;;  %s4218_s23 = smov (!%p38_p0, %s40_s23), %s3451_s19 }
  0x15   : > { %4183 = sst [smem:[#allocation15_spill]] %s4216_s22  ;;  %s45_s25 = ssub.s32 %s3447_s18, %s4216_s22 }
  0x16   : > { %p57_p2 = scmp.eq.s32.totalorder %s3455_s20, 0  ;;  %p42_p3 = scmp.ge.s32.totalorder %s4218_s23, 2 }
  0x17   : > { %p62_p4 = scmp.ne.s32.totalorder %s3431_s30, %s3427_s29  ;;  %p3605_p6 = scmp.eq.s32.totalorder %s2472_s21, 0 }
  0x18   : > { %p3601_p5 = por %p57_p2, %p56_p1  ;;  %s4220_s23 = smov (%p42_p3, %s4218_s23), 0 }
  0x19   : > { %s4185_s27 = scalar_select %p3605_p6, 1, 0 }
  0x1a   : > { %s4184_s26 = scalar_select %p3601_p5, 1, 0 }
  0x1b   : > { %4186 = sst [smem:[#allocation16_spill]] %s4220_s23  ;;  %p3613_p7 = por %p3605_p6, %p62_p4 }
  0x1c   : > { %p2474_p8 = scmp.ge.s32.totalorder %s3455_s20, 1  ;;  %s44_s29 = ssub.s32 %s3451_s19, %s4220_s23 }
  0x1d   : > { %s4187_s28 = scalar_select %p3613_p7, 1, 0 }
  0x1e   : > { %p384_p9 = scmp.lt.s32.totalorder %s3455_s20, 5  ;;  %s46_s22 = sor.u32 %s45_s25, %s44_s29 }
  0x1f   : > { %p47_p10 = scmp.eq.s32.totalorder %s46_s22, 0  ;;  %s3457_s11 = smov [#allocation7]  }
  0x20   : > { %p3621_p11 = pnand %p2474_p8, %p384_p9  ;;  %s411_s9 = sshll.u32 %s3457_s11, 4  ;;  %s412_s9 = int_to_ptr.vmem [resolvable:$true] %s411_s9 }
  0x21   : > { %s3626_s13 = scalar_select %p47_p10, %s3435_s15, %s49_s24  }
  0x22   : > { %s4188_s21 = scalar_select %p3621_p11, 1, 0 }
  0x23   : > { %4189 = sst [smem:[#allocation17_spill]] %s3626_s13  ;;  %p3154_p12 = pneg %p3621_p11 }
  0x24   : > { %s3458_s22 = smov [#allocation9]   ;;  %s3329_s24 = scalar_lea.hbm %s4156_s8, 2048 }
  0x25   : > { %p3632_p13 = pnand %p3154_p12, %p3605_p6  ;;  %s427_s25 = sshll.u32 %s3458_s22, 4  ;;  %s3636_s25 = int_to_ptr.vmem [resolvable:$true] %s427_s25 }
  0x26   : > { %p3330_p0 = scmp.ne.s32.totalorder %s4156_s8, %s3329_s24  ;;  %p3336_p4 = scmp.lt.u32.totalorder %s3329_s24, %s4156_s8 }
  0x27   : > { %p3331_p1 = pneg %p3632_p13 }
  0x29   : > { %p3332_p2 = pnand %p3331_p1, %p3330_p0 }
  0x2b   : > { %p3333_p3 = pneg %p3332_p2 }
  0x2d   : > { %p3338_p8 = pnand %p3336_p4, %p3333_p3 }
  0x2f   : > { %3341 = shalt.err (!%p3338_p8)
}
  0x30   : > { %s3342_s22 = scalar_lea.vmem %s412_s9, 2048  ;;  %p3350_p6 = scmp.lt.s32.totalorder %s412_s9, %s412_s9 }
  0x31   : > { %p3343_p9 = scmp.ne.s32.totalorder %s412_s9, %s3342_s22  ;;  %p3351_p7 = scmp.lt.s32.totalorder %s3342_s22, %s3342_s22 }
  0x33   : > { %p3345_p10 = pnand %p3343_p9, %p3331_p1  ;;  %p3352_p11 = por %p3351_p7, %p3350_p6 }
  0x35   : > { %p3346_p12 = pneg %p3345_p10 }
  0x37   : > { %p3353_p5 = pnand %p3352_p11, %p3346_p12 }
  0x39   : > { %3356 = shalt.err (!%p3353_p5)
}
  0x3a   : > { %s3459_s7 = smov 128   ;;  %s3460_s13 = smov 8  }
  0x3b   : > { %3157 = dma.hbm_to_vmem [thread:$0]  (!%p3632_p13), %s4156_s8, 2048, %s412_s9, [#allocation8], %s3459_s7, %s3459_s7, %s3460_s13  }
  0x3c   : > { %s3357_s11 = scalar_lea.hbm %s4158_s10, 2048 }
  0x3d   : > { %p3358_p0 = scmp.ne.s32.totalorder %s4158_s10, %s3357_s11  ;;  %p3364_p7 = scmp.lt.u32.totalorder %s3357_s11, %s4158_s10 }
  0x3f   : > { %p3360_p5 = pnand %p3358_p0, %p3331_p1 }
  0x41   : > { %p3361_p6 = pneg %p3360_p5 }
  0x43   : > { %p3366_p11 = pnand %p3364_p7, %p3361_p6 }
  0x45   : > { %3369 = shalt.err (!%p3366_p11)
}
  0x46   : > { %s3370_s9 = scalar_lea.vmem %s3636_s25, 2048  ;;  %p3378_p8 = scmp.lt.s32.totalorder %s3636_s25, %s3636_s25 }
  0x47   : > { %p3371_p2 = scmp.ne.s32.totalorder %s3636_s25, %s3370_s9  ;;  %p3379_p9 = scmp.lt.s32.totalorder %s3370_s9, %s3370_s9 }
  0x49   : > { %p3373_p3 = pnand %p3371_p2, %p3331_p1  ;;  %p3380_p10 = por %p3379_p9, %p3378_p8 }
  0x4b   : > { %p3374_p4 = pneg %p3373_p3 }
  0x4d   : > { %p3381_p12 = pnand %p3380_p10, %p3374_p4 }
  0x4f   : > { %3384 = shalt.err (!%p3381_p12)
}
  0x50   : > { %3160 = dma.hbm_to_vmem [thread:$0]  (!%p3632_p13), %s4158_s10, 2048, %s3636_s25, [#allocation8], %s3459_s7, %s3459_s7, %s3460_s13  }
  0x51   : > { %p2477_p0 = scmp.ge.s32.totalorder %s3455_s20, 4 }
  0x53   : > { %446 = sbr.rel (%p2477_p0) target bundleno = 115 (0x73), region = 60 }
  0x5a   : > { %s3687_s6 = sand.u32 1, %s3435_s15   ;;  %s2480_s4 = sshll.u32 %s3447_s18, 4 }
  0x5b   : > { %s2478_s12 = sshll.u32 %s3687_s6, 9  ;;  %s2570_s23 = sshll.u32 %s3451_s19, 8 }
  0x5c   : > { %s461_s29 = sadd.s32 %s2570_s23, %s2480_s4  ;;  %s454_s25 = scalar_lea.vmem [#allocation4], %s2478_s12 }
  0x5d   : > { %s476_s7 = sshll.u32 %s454_s25, 4  ;;  %s2482_s13 = sshll.u32 %s461_s29, 6  ;;  %s477_s7 = int_to_ptr.vmem [resolvable:$true] %s476_s7 }
  0x5e   : > { %p4191_p13 = scmp.ne.s32.totalorder %s4184_s26, 0  ;;  %s3461_s11 = smov 2048  }
  0x5f   : > { %s3462_s9 = smov 1024   ;;  %s3463_s3 = smov 16  }
  0x60   : > { %s3141_s24 = scalar_select %p4191_p13, [#allocation0], [#allocation12] }
  0x61   : > { %3142 = sst [smem:[#allocation11]] (%p4191_p13), %s3461_s11  ;;  %s3464_s5 = smov 64  }
  0x62   : > { %s468_s22 = sld [smem:[%s3141_s24]]   ;;  %s3465_s29 = smov 4  }
  0x63   : > { %3143 = sst [smem:[#allocation11 + $0x1]] (%p4191_p13), %s3462_s9  ;;  %s4192_s0 = sld [smem:[#allocation18_spill]] }
  0x64   : > { %3144 = sst [smem:[#allocation11 + $0x2]] (%p4191_p13), %s3463_s3  ;;  %s451_s11 = scalar_lea.sflag [#allocation5], %s3687_s6 }
  0x65   : > { %3145 = sst [smem:[#allocation11 + $0x3]] (%p4191_p13), %s3464_s5  ;;  %s3466_s9 = smov [#allocation10]  }
  0x66   : > { %3146 = sst [smem:[#allocation11 + $0x4]] (%p4191_p13), %s3464_s5  ;;  %498 = sbr.rel (!%p4191_p13) target bundleno = 115 (0x73), region = 68 }
  0x67   : > { %3147 = sst [smem:[#allocation11 + $0x5]] (%p4191_p13), %s3465_s29  ;;  %s2485_s3 = sshll.u32 (%p4191_p13), %s3687_s6, 3 }
  0x68   : > { %s2483_s25 = sshll.u32 %s468_s22, 26  ;;  %s2571_s4 = sshll.u32 (%p4191_p13), %s3451_s19, 4 }
  0x69   : > { %s463_s23 = scalar_lea.hbm %s4192_s0, %s2482_s13  ;;  %s2484_s24 = sadd.s32 134217728, %s2483_s25 }
  0x6a   : > { %3148 = dma.general (%p4191_p13), %s463_s23, 8192, %s477_s7, %s451_s11, %s3466_s9, [#allocation11], %s2484_s24, 0  }
  0x6b   : > { %s505_s13 = sadd.s32 (%p4191_p13), %s3447_s18, %s2571_s4  ;;  %s502_s22 = scalar_lea.vmem (%p4191_p13), [#allocation6], %s2485_s3 }
  0x6c   : > { %s506_s0 = scalar_lea.vmem (%p4191_p13), %s4149_s1, %s505_s13 }
  0x6d   : > { %v522_v0 = vld [vmem:[%s506_s0] sm:$0x1]  ;;  %v524_v1 = vld [vmem:[%s506_s0 + $0x2] sm:$0x1]  ;;  %v526_v2 = vld [vmem:[%s506_s0 + $0x4] sm:$0x1] }
  0x6e   : > { %523 = vst [vmem:[%s502_s22] sm:$0x1] %v522_v0  ;;  %525 = vst [vmem:[%s502_s22 + $0x1] sm:$0x1] %v524_v1  ;;  %v528_v3 = vld [vmem:[%s506_s0 + $0x6] sm:$0x1] }
  0x6f   : > { %527 = vst [vmem:[%s502_s22 + $0x2] sm:$0x1] %v526_v2  ;;  %v530_v4 = vld [vmem:[%s506_s0 + $0x8] sm:$0x1]  ;;  %v532_v5 = vld [vmem:[%s506_s0 + $0xa] sm:$0x1] }
  0x70   : > { %529 = vst [vmem:[%s502_s22 + $0x3] sm:$0x1] %v528_v3  ;;  %531 = vst [vmem:[%s502_s22 + $0x4] sm:$0x1] %v530_v4  ;;  %v534_v6 = vld [vmem:[%s506_s0 + $0xc] sm:$0x1] }
  0x71   : > { %533 = vst [vmem:[%s502_s22 + $0x5] sm:$0x1] %v532_v5  ;;  %v536_v7 = vld [vmem:[%s506_s0 + $0xe] sm:$0x1]  ;;  %535 = vst [vmem:[%s502_s22 + $0x6] sm:$0x1] %v534_v6 }
  0x72   : > { %537 = vst [vmem:[%s502_s22 + $0x7] sm:$0x1] %v536_v7 }
  0x73 PF: > { %p4193_p1 = scmp.ne.s32.totalorder %s4188_s21, 0 }
  0x74   : > { %s588_s26 = sand.u32 (!%p4193_p1), 1, %s3431_s30   ;;  %p4194_p5 = scmp.ne.s32.totalorder (!%p4193_p1), %s4187_s28, 0 }
  0x75   : > { %586 = sbr.rel (%p4193_p1) target bundleno = 1463 (0x5b7), region = 113  ;;  %s2489_s6 = sshll.u32 (!%p4193_p1), %s588_s26, 9 }
  0x76   : > { %s589_s7 = scalar_lea.sflag (!%p4193_p1), [#allocation5], %s588_s26  ;;  %s3723_s23 = scalar_lea.vmem (!%p4193_p1), [#allocation4], %s2489_s6 }
  0x7c   : > { %3418 = dma.done.wait (%p4194_p5), %s589_s7, 8192  }
  0x7d   : > { %3420 = vsyncadd (%p4194_p5), %s589_s7, 4294959104  ;;  %s2490_s0 = sshll.u32 %s588_s26, 3  ;;  %p4195_p6 = scmp.ne.s32.totalorder %s4185_s27, 0 }
  0x7e   : > { %s3729_s29 = scalar_lea.vmem [#allocation6], %s2490_s0 }
  0x7f   : > { %3422 = dma.done.wait (%p4195_p6), [#allocation8], 4096  }
  0x80   : > { %3424 = vsyncadd (%p4195_p6), [#allocation8], 4294963200  ;;  %p662_p7 = scmp.lt.s32.totalorder %s3443_s17, 1  ;;  %p2495_p11 = scmp.ne.s32.totalorder %s3439_s16, 0 }
  0x81   : > { %vm683_vm0 = vcmask (!%p2495_p11), 0   ;;  %v3467_v8 = vmov (!%p2495_p11), 0.0  }
  0x82   : > { %s4222_s17 = smov (!%p662_p7, %s3443_s17), 1  ;;  %674 = sbr.rel (%p2495_p11) target bundleno = 139 (0x8b), region = 133 }
  0x83   : > { %s2493_s21 = sshll.u32 %s4222_s17, 3  ;;  %675 = vst [vmem:[#allocation2] sm:$0x1] (!%p2495_p11), %v3467_v8  ;;  %676 = vst [vmem:[#allocation2 + $0x1] sm:$0x1] (!%p2495_p11), %v3467_v8 }
  0x84   : > { %s3740_s11 = scalar_lea.vmem %s4150_s2, %s2493_s21  ;;  %s3745_s3 = scalar_lea.vmem %s4162_s14, %s2493_s21  ;;  %677 = vst [vmem:[#allocation2 + $0x2] sm:$0x1] (!%p2495_p11), %v3467_v8  ;;  %678 = vst [vmem:[#allocation2 + $0x3] sm:$0x1] (!%p2495_p11), %v3467_v8 }
  0x85   : > { %679 = vst [vmem:[#allocation2 + $0x4] sm:$0x1] (!%p2495_p11), %v3467_v8  ;;  %680 = vst [vmem:[#allocation2 + $0x5] sm:$0x1] (!%p2495_p11), %v3467_v8 }
  0x86   : > { %681 = vst [vmem:[#allocation2 + $0x6] sm:$0x1] (!%p2495_p11), %v3467_v8  ;;  %682 = vst [vmem:[#allocation2 + $0x7] sm:$0x1] (!%p2495_p11), %v3467_v8 }
  0x87   : > { %684 = vst.msk [vmem:[#allocation3] sm:$0x1] (!%p2495_p11), %vm683_vm0, %v3467_v8  ;;  %685 = vst.msk [vmem:[#allocation3 + $0x1] sm:$0x1] (!%p2495_p11), %vm683_vm0, %v3467_v8 }
  0x88   : > { %686 = vst.msk [vmem:[#allocation3 + $0x2] sm:$0x1] (!%p2495_p11), %vm683_vm0, %v3467_v8  ;;  %687 = vst.msk [vmem:[#allocation3 + $0x3] sm:$0x1] (!%p2495_p11), %vm683_vm0, %v3467_v8 }
  0x89   : > { %688 = vst.msk [vmem:[#allocation3 + $0x4] sm:$0x1] %vm683_vm0, %v3467_v8  ;;  %689 = vst.msk [vmem:[#allocation3 + $0x5] sm:$0x1] %vm683_vm0, %v3467_v8 }
  0x8a   : > { %690 = vst.msk [vmem:[#allocation3 + $0x6] sm:$0x1] %vm683_vm0, %v3467_v8  ;;  %691 = vst.msk [vmem:[#allocation3 + $0x7] sm:$0x1] %vm683_vm0, %v3467_v8 }
  0x8b PF: > { %v3247_v9 = vld [vmem:[%s3723_s23] sm:$0xff]   ;;  %v3468_v10 = vmov 0.0   ;;  %v3249_v12 = vld [vmem:[%s3723_s23 + $0x8] sm:$0xff]   ;;  %vm3469_vm1 = vmmov 0   ;;  %v3251_v14 = vld [vmem:[%s3723_s23 + $0x10] sm:$0xff]   ;;  %vm1572_vm2 = vcmask 1040384  }
  0x8c   : > { %2719 = vmatprep.subr.bf16.mxu0 %v3468_v10  ;;  %2739 = vmatprep.subr.bf16.mxu1 %v3468_v10  ;;  %v3248_v11 = vld [vmem:[%s3723_s23 + $0x40] sm:$0xff]   ;;  %v3250_v13 = vld [vmem:[%s3723_s23 + $0x48] sm:$0xff]   ;;  %v3252_v15 = vld [vmem:[%s3723_s23 + $0x50] sm:$0xff]   ;;  %vm1605_vm3 = vcmask 0   ;;  %p2560_p2 = scmp.ne.s32.totalorder %s3439_s16, 1 }
  0x8d   : > { %2720 = vmatpush3.bf16.msra.mxu0 %v3247_v9  ;;  %2735 = vmatprep.mubr.msk.bf16.mxu0 %vm3469_vm1, %v3468_v10  ;;  %v3253_v16 = vld [vmem:[%s3723_s23 + $0x18] sm:$0xff]   ;;  %v3255_v18 = vld [vmem:[%s3723_s23 + $0x20] sm:$0xff]   ;;  %v3257_v24 = vld [vmem:[%s3723_s23 + $0x28] sm:$0xff]   ;;  %s4196_s4 = sld [smem:[#allocation19_spill]] (!%p2560_p2)  ;;  %vm1755_vm4 = vcmask (!%p2560_p2), 64512   ;;  %vm3471_vm5 = vmmov (!%p2560_p2), 0  }
  0x8e   : > { %2740 = vmatpush3.bf16.msra.mxu1 %v3248_v11  ;;  %2721 = vmatprep.subr.bf16.mxu0 %v3468_v10  ;;  %v3254_v17 = vld [vmem:[%s3723_s23 + $0x58] sm:$0xff]   ;;  %v3256_v19 = vld [vmem:[%s3723_s23 + $0x60] sm:$0xff]   ;;  %v3258_v25 = vld [vmem:[%s3723_s23 + $0x68] sm:$0xff]   ;;  %s4197_s12 = sld [smem:[#allocation21_spill]] (!%p2560_p2)  ;;  %s4198_s9 = sld [smem:[#allocation22_spill]] (!%p2560_p2)  ;;  %vm1849_vm6 = vcmask (!%p2560_p2), 261120  }
  0x8f   : > { %2741 = vmatprep.subr.bf16.mxu1 %v3468_v10  ;;  %2755 = vmatprep.mubr.msk.bf16.mxu1 %vm3469_vm1, %v3468_v10  ;;  %v692_v20 = vld [vmem:[%s3729_s29] sm:$0x1]  ;;  %v693_v21 = vld [vmem:[%s3729_s29 + $0x1] sm:$0x1]  ;;  %v3259_v28 = vld [vmem:[%s3723_s23 + $0x30] sm:$0xff]   ;;  %s4199_s6 = sld [smem:[#allocation20_spill]] (!%p2560_p2) }
  0x90   : > { %v1564_v22 = vunpack.c.l.bf16 %v692_v20  ;;  %v1565_v23 = vunpack.c.l.bf16 %v693_v21  ;;  %v3260_v29 = vld [vmem:[%s3723_s23 + $0x70] sm:$0xff]   ;;  %v3261_v30 = vld [vmem:[%s3723_s23 + $0x38] sm:$0xff]   ;;  %v3263_v32 = vld [vmem:[%s3723_s23 + $0x80] sm:$0xff]   ;;  %s4200_s0 = sld [smem:[#allocation23_spill]] (!%p2560_p2)  ;;  %s4201_s25 = sld [smem:[#allocation26_spill]] (!%p2560_p2)  ;;  %vm2341_vm7 = vcmask (!%p2560_p2), 15360  }
  0x91   : > { %2722 = vmatpush3.bf16.msra.mxu0 %v3249_v12  ;;  %v3262_v31 = vld [vmem:[%s3723_s23 + $0x78] sm:$0xff]   ;;  %v3264_v33 = vld [vmem:[%s3723_s23 + $0xc0] sm:$0xff]   ;;  %v3265_v37 = vld [vmem:[%s3723_s23 + $0x88] sm:$0xff]   ;;  %s4204_s27 = sld [smem:[#allocation27_spill]] (!%p2560_p2) }
  0x92   : > { %2742 = vmatpush3.bf16.msra.mxu1 %v3250_v13  ;;  %2723 = vmatprep.subr.bf16.mxu0 %v3468_v10  ;;  %v1573_v26 = vsel %vm1572_vm2, %v1564_v22, 0.0  ;;  %v1576_v27 = vsel %vm1572_vm2, %v1565_v23, 0.0  ;;  %v3801_v34 = vld [vmem:[%s3729_s29 + $0x2] sm:$0x1]  ;;  %v3804_v35 = vld [vmem:[%s3729_s29 + $0x3] sm:$0x1] }
  0x93   : > { %2743 = vmatprep.subr.bf16.mxu1 %v3468_v10  ;;  %1574 = vadd.xlane.f32.xlu0 %v1573_v26  ;;  %v1566_v36 = vunpack.c.l.bf16 %v3801_v34  ;;  %v1567_v38 = vunpack.c.l.bf16 %v3804_v35  ;;  %v3266_v39 = vld [vmem:[%s3723_s23 + $0xc8] sm:$0xff]   ;;  %v3267_v41 = vld [vmem:[%s3723_s23 + $0x90] sm:$0xff]   ;;  %v3269_v44 = vld [vmem:[%s3723_s23 + $0x98] sm:$0xff]  }
  0x94   : > { %v3268_v43 = vld [vmem:[%s3723_s23 + $0xd0] sm:$0xff]   ;;  %v3270_v45 = vld [vmem:[%s3723_s23 + $0xd8] sm:$0xff]   ;;  %v3271_v46 = vld [vmem:[%s3723_s23 + $0xa0] sm:$0xff]  }
  0x95   : > { %2724 = vmatpush3.bf16.msra.mxu0 %v3251_v14  ;;  %v1579_v40 = vsel %vm1572_vm2, %v1566_v36, 0.0  ;;  %v1582_v42 = vsel %vm1572_vm2, %v1567_v38, 0.0  ;;  %v3272_v47 = vld [vmem:[%s3723_s23 + $0xe0] sm:$0xff]   ;;  %v3273_v50 = vld [vmem:[%s3723_s23 + $0xa8] sm:$0xff]   ;;  %v3275_v56 = vld [vmem:[%s3723_s23 + $0xb0] sm:$0xff]  }
  0x96   : > { %2744 = vmatpush3.bf16.msra.mxu1 %v3252_v15  ;;  %2725 = vmatprep.subr.bf16.mxu0 %v3468_v10  ;;  %v3831_v48 = vld [vmem:[%s3729_s29 + $0x4] sm:$0x1]  ;;  %v3834_v49 = vld [vmem:[%s3729_s29 + $0x5] sm:$0x1]  ;;  %v3276_v57 = vld [vmem:[%s3723_s23 + $0xf0] sm:$0xff]  }
  0x97   : > { %2745 = vmatprep.subr.bf16.mxu1 %v3468_v10  ;;  %1577 = vadd.xlane.f32.xlu0 %v1576_v27  ;;  %v1569_v51 = vunpack.c.l.bf16 %v3834_v49  ;;  %v1568_v52 = vunpack.c.l.bf16 %v3831_v48  ;;  %v3274_v53 = vld [vmem:[%s3723_s23 + $0xe8] sm:$0xff]   ;;  %v3277_v58 = vld [vmem:[%s3723_s23 + $0xb8] sm:$0xff]   ;;  %v3279_v60 = vld [vmem:[%s3723_s23 + $0x100] sm:$0xff]  }
  0x98   : > { %1580 = vadd.xlane.f32.xlu1 %v1579_v40  ;;  %v3278_v59 = vld [vmem:[%s3723_s23 + $0xf8] sm:$0xff]   ;;  %v3280_v61 = vld [vmem:[%s3723_s23 + $0x140] sm:$0xff]   ;;  %v3281_v62 = vld [vmem:[%s3723_s23 + $0x108] sm:$0xff]  }
  0x99   : > { %2726 = vmatpush3.bf16.msra.mxu0 %v3253_v16  ;;  %v1588_v54 = vsel %vm1572_vm2, %v1569_v51, 0.0  ;;  %v1585_v55 = vsel %vm1572_vm2, %v1568_v52, 0.0  ;;  %v3860_v63 = vld [vmem:[%s3729_s29 + $0x6] sm:$0x1]  ;;  %v3863_v0 = vld [vmem:[%s3729_s29 + $0x7] sm:$0x1] }
  0x9a   : > { %2746 = vmatpush3.bf16.msra.mxu1 %v3254_v17  ;;  %2727 = vmatprep.subr.bf16.mxu0 %v3468_v10  ;;  %v3282_v1 = vld [vmem:[%s3723_s23 + $0x148] sm:$0xff]   ;;  %v1571_v2 = vunpack.c.l.bf16 %v3863_v0  ;;  %v1570_v3 = vunpack.c.l.bf16 %v3860_v63  ;;  %v3283_v6 = vld [vmem:[%s3723_s23 + $0x110] sm:$0xff]   ;;  %v3285_v8 = vld [vmem:[%s3723_s23 + $0x118] sm:$0xff]  }
  0x9b   : > { %2747 = vmatprep.subr.bf16.mxu1 %v3468_v10  ;;  %1586 = vadd.xlane.f32.xlu0 %v1585_v55  ;;  %v3284_v7 = vld [vmem:[%s3723_s23 + $0x150] sm:$0xff]   ;;  %v3286_v9 = vld [vmem:[%s3723_s23 + $0x158] sm:$0xff]   ;;  %v3287_v11 = vld [vmem:[%s3723_s23 + $0x120] sm:$0xff]  }
  0x9c   : > { %1583 = vadd.xlane.f32.xlu1 %v1582_v42  ;;  %v1594_v4 = vsel %vm1572_vm2, %v1571_v2, 0.0  ;;  %v1591_v5 = vsel %vm1572_vm2, %v1570_v3, 0.0  ;;  %v3288_v12 = vld [vmem:[%s3723_s23 + $0x160] sm:$0xff]   ;;  %v3289_v13 = vld [vmem:[%s3723_s23 + $0x128] sm:$0xff]   ;;  %v3291_v15 = vld [vmem:[%s3723_s23 + $0x130] sm:$0xff]  }
  0x9d   : > { %2728 = vmatpush3.bf16.msra.mxu0 %v3255_v18  ;;  %v3290_v14 = vld [vmem:[%s3723_s23 + $0x168] sm:$0xff]   ;;  %v3292_v16 = vld [vmem:[%s3723_s23 + $0x170] sm:$0xff]   ;;  %v3293_v17 = vld [vmem:[%s3723_s23 + $0x138] sm:$0xff]  }
  0x9e   : > { %2748 = vmatpush3.bf16.msra.mxu1 %v3256_v19  ;;  %2729 = vmatprep.subr.bf16.mxu0 %v3468_v10  ;;  %v3294_v18 = vld [vmem:[%s3723_s23 + $0x178] sm:$0xff]   ;;  %v3295_v19 = vld [vmem:[%s3723_s23 + $0x180] sm:$0xff]   ;;  %v3298_v22 = vld [vmem:[%s3723_s23 + $0x1c8] sm:$0xff]  }
  0x9f   : > { %2749 = vmatprep.subr.bf16.mxu1 %v3468_v10  ;;  %1592 = vadd.xlane.f32.xlu0 %v1591_v5  ;;  %v3299_v23 = vld [vmem:[%s3723_s23 + $0x190] sm:$0xff]   ;;  %v3302_v26 = vld [vmem:[%s3723_s23 + $0x1d8] sm:$0xff]   ;;  %v3303_v27 = vld [vmem:[%s3723_s23 + $0x1a0] sm:$0xff]  }
  0xa0   : > { %1589 = vadd.xlane.f32.xlu1 %v1588_v54  ;;  %v1557_v42 = vld [vmem:[#allocation3 + $0x1] sm:$0x1]  ;;  %v1563_v52 = vld [vmem:[#allocation3 + $0x7] sm:$0x1]  ;;  %v1562_v55 = vld [vmem:[#allocation3 + $0x6] sm:$0x1] }
  0xa1   : > { %2730 = vmatpush3.bf16.msra.mxu0 %v3257_v24  ;;  %v3300_v24 = vld [vmem:[%s3723_s23 + $0x1d0] sm:$0xff]  }
  0xa2   : > { %2750 = vmatpush3.bf16.msra.mxu1 %v3258_v25  ;;  %2731 = vmatprep.subr.bf16.mxu0 %v3468_v10  ;;  %v3301_v25 = vld [vmem:[%s3723_s23 + $0x198] sm:$0xff]  }
  0xa3   : > { %2751 = vmatprep.subr.bf16.mxu1 %v3468_v10 }
  0xa4   : > { %1595 = vadd.xlane.f32.xlu1 %v1594_v4 }
  0xa5   : > { %2732 = vmatpush3.bf16.msra.mxu0 %v3259_v28  ;;  %v3304_v28 = vld [vmem:[%s3723_s23 + $0x1e0] sm:$0xff]  }
  0xa6   : > { %2752 = vmatpush3.bf16.msra.mxu1 %v3260_v29  ;;  %2733 = vmatprep.subr.bf16.mxu0 %v3468_v10  ;;  %v3305_v29 = vld [vmem:[%s3723_s23 + $0x1a8] sm:$0xff]  }
  0xa7   : > { %2753 = vmatprep.subr.bf16.mxu1 %v3468_v10 }
  0xa9   : > { %2734 = vmatpush3.bf16.msra.mxu0 %v3261_v30  ;;  %v3306_v30 = vld [vmem:[%s3723_s23 + $0x1e8] sm:$0xff]  }
  0xaa   : > { %2754 = vmatpush3.bf16.msra.mxu1 %v3262_v31  ;;  %2759 = vmatprep.subr.bf16.mxu0 %v3468_v10  ;;  %v3307_v31 = vld [vmem:[%s3723_s23 + $0x1b0] sm:$0xff]  }
  0xab   : > { %2779 = vmatprep.subr.bf16.mxu1 %v3468_v10 }
  0xac   : > { %2736 = vmatmul.mubr.bf16.vlgmr.msra.gmra.mrb[0].mxu0 %v692_v20  ;;  %v3296_v20 = vld [vmem:[%s3723_s23 + $0x1c0] sm:$0xff]  }
  0xad   : > { %2756 = vmatmul.mubr.bf16.vlgmr.msra.gmra.mrb[0].mxu1 %v693_v21  ;;  %2760 = vmatpush3.bf16.msra.mxu0 %v3263_v32  ;;  %v3297_v21 = vld [vmem:[%s3723_s23 + $0x188] sm:$0xff]   ;;  %v3308_v32 = vld [vmem:[%s3723_s23 + $0x1f0] sm:$0xff]  }
  0xae   : > { %2780 = vmatpush3.bf16.msra.mxu1 %v3264_v33  ;;  %2761 = vmatprep.subr.bf16.mxu0 %v3468_v10  ;;  %v3309_v33 = vld [vmem:[%s3723_s23 + $0x1b8] sm:$0xff]  }
  0xaf   : > { %2781 = vmatprep.subr.bf16.mxu1 %v3468_v10  ;;  %2775 = vmatprep.mubr.msk.bf16.mxu0 %vm3469_vm1, %v3468_v10 }
  0xb0   : > { %2795 = vmatprep.mubr.msk.bf16.mxu1 %vm3469_vm1, %v3468_v10 }
  0xb1   : > { %2762 = vmatpush3.bf16.msra.mxu0 %v3265_v37  ;;  %v1556_v37 = vld [vmem:[#allocation3] sm:$0x1] }
  0xb2   : > { %2782 = vmatpush3.bf16.msra.mxu1 %v3266_v39  ;;  %2763 = vmatprep.subr.bf16.mxu0 %v3468_v10 }
  0xb3   : > { %2783 = vmatprep.subr.bf16.mxu1 %v3468_v10 }
  0xb5   : > { %2764 = vmatpush3.bf16.msra.mxu0 %v3267_v41  ;;  %v1559_v41 = vld [vmem:[#allocation3 + $0x3] sm:$0x1] }
  0xb6   : > { %2784 = vmatpush3.bf16.msra.mxu1 %v3268_v43  ;;  %2765 = vmatprep.subr.bf16.mxu0 %v3468_v10 }
  0xb7   : > { %2785 = vmatprep.subr.bf16.mxu1 %v3468_v10 }
  0xb9   : > { %2766 = vmatpush3.bf16.msra.mxu0 %v3269_v44 }
  0xba   : > { %2786 = vmatpush3.bf16.msra.mxu1 %v3270_v45  ;;  %2767 = vmatprep.subr.bf16.mxu0 %v3468_v10 }
  0xbb   : > { %2787 = vmatprep.subr.bf16.mxu1 %v3468_v10 }
  0xbd   : > { %2768 = vmatpush3.bf16.msra.mxu0 %v3271_v46  ;;  %v1561_v46 = vld [vmem:[#allocation3 + $0x5] sm:$0x1] }
  0xbe   : > { %2788 = vmatpush3.bf16.msra.mxu1 %v3272_v47  ;;  %2769 = vmatprep.subr.bf16.mxu0 %v3468_v10  ;;  %v1560_v47 = vld [vmem:[#allocation3 + $0x4] sm:$0x1] }
  0xbf   : > { %2789 = vmatprep.subr.bf16.mxu1 %v3468_v10 }
  0xc1   : > { %2770 = vmatpush3.bf16.msra.mxu0 %v3273_v50 }
  0xc2   : > { %2790 = vmatpush3.bf16.msra.mxu1 %v3274_v53  ;;  %2771 = vmatprep.subr.bf16.mxu0 %v3468_v10 }
  0xc3   : > { %2791 = vmatprep.subr.bf16.mxu1 %v3468_v10 }
  0xc5   : > { %2772 = vmatpush3.bf16.msra.mxu0 %v3275_v56 }
  0xc6   : > { %2792 = vmatpush3.bf16.msra.mxu1 %v3276_v57  ;;  %2773 = vmatprep.subr.bf16.mxu0 %v3468_v10 }
  0xc7   : > { %2793 = vmatprep.subr.bf16.mxu1 %v3468_v10 }
  0xc9   : > { %2774 = vmatpush3.bf16.msra.mxu0 %v3277_v58  ;;  %v700_v58 = vld [vmem:[#allocation2] sm:$0x1] }
  0xca   : > { %2794 = vmatpush3.bf16.msra.mxu1 %v3278_v59  ;;  %2799 = vmatprep.subr.bf16.mxu0 %v3468_v10  ;;  %v701_v59 = vld [vmem:[#allocation2 + $0x1] sm:$0x1] }
  0xcb   : > { %2819 = vmatprep.subr.bf16.mxu1 %v3468_v10 }
  0xcc   : > { %2776 = vmatmul.mubr.bf16.vlgmr.msra.gmra.mrb[4].mxu0 %v3801_v34  ;;  %v3310_v34 = vld [vmem:[%s3723_s23 + $0x1f8] sm:$0xff]  }
  0xcd   : > { %2796 = vmatmul.mubr.bf16.vlgmr.msra.gmra.mrb[4].mxu1 %v3804_v35  ;;  %2800 = vmatpush3.bf16.msra.mxu0 %v3279_v60  ;;  %v1558_v35 = vld [vmem:[#allocation3 + $0x2] sm:$0x1] }
  0xce   : > { %2820 = vmatpush3.bf16.msra.mxu1 %v3280_v61  ;;  %2801 = vmatprep.subr.bf16.mxu0 %v3468_v10 }
  0xcf   : > { %2821 = vmatprep.subr.bf16.mxu1 %v3468_v10  ;;  %2815 = vmatprep.mubr.msk.bf16.mxu0 %vm3469_vm1, %v3468_v10 }
  0xd0   : > { %2835 = vmatprep.mubr.msk.bf16.mxu1 %vm3469_vm1, %v3468_v10 }
  0xd1   : > { %2802 = vmatpush3.bf16.msra.mxu0 %v3281_v62 }
  0xd2   : > { %2822 = vmatpush3.bf16.msra.mxu1 %v3282_v1  ;;  %2803 = vmatprep.subr.bf16.mxu0 %v3468_v10 }
  0xd3   : > { %2823 = vmatprep.subr.bf16.mxu1 %v3468_v10 }
  0xd5   : > { %2804 = vmatpush3.bf16.msra.mxu0 %v3283_v6  ;;  %v702_v6 = vld [vmem:[#allocation2 + $0x2] sm:$0x1] }
  0xd6   : > { %2824 = vmatpush3.bf16.msra.mxu1 %v3284_v7  ;;  %2805 = vmatprep.subr.bf16.mxu0 %v3468_v10  ;;  %v703_v7 = vld [vmem:[#allocation2 + $0x3] sm:$0x1] }
  0xd7   : > { %2825 = vmatprep.subr.bf16.mxu1 %v3468_v10 }
  0xd9   : > { %2806 = vmatpush3.bf16.msra.mxu0 %v3285_v8 }
  0xda   : > { %2826 = vmatpush3.bf16.msra.mxu1 %v3286_v9  ;;  %2807 = vmatprep.subr.bf16.mxu0 %v3468_v10 }
  0xdb   : > { %2827 = vmatprep.subr.bf16.mxu1 %v3468_v10 }
  0xdd   : > { %2808 = vmatpush3.bf16.msra.mxu0 %v3287_v11 }
  0xde   : > { %2828 = vmatpush3.bf16.msra.mxu1 %v3288_v12  ;;  %2809 = vmatprep.subr.bf16.mxu0 %v3468_v10 }
  0xdf   : > { %2829 = vmatprep.subr.bf16.mxu1 %v3468_v10 }
  0xe1   : > { %2810 = vmatpush3.bf16.msra.mxu0 %v3289_v13 }
  0xe2   : > { %2830 = vmatpush3.bf16.msra.mxu1 %v3290_v14  ;;  %2811 = vmatprep.subr.bf16.mxu0 %v3468_v10 }
  0xe3   : > { %2831 = vmatprep.subr.bf16.mxu1 %v3468_v10 }
  0xe5   : > { %2812 = vmatpush3.bf16.msra.mxu0 %v3291_v15 }
  0xe6   : > { %2832 = vmatpush3.bf16.msra.mxu1 %v3292_v16  ;;  %2813 = vmatprep.subr.bf16.mxu0 %v3468_v10 }
  0xe7   : > { %2833 = vmatprep.subr.bf16.mxu1 %v3468_v10 }
  0xe9   : > { %2814 = vmatpush3.bf16.msra.mxu0 %v3293_v17 }
  0xea   : > { %2834 = vmatpush3.bf16.msra.mxu1 %v3294_v18  ;;  %2839 = vmatprep.subr.bf16.mxu0 %v3468_v10 }
  0xeb   : > { %2859 = vmatprep.subr.bf16.mxu1 %v3468_v10 }
  0xec   : > { %2816 = vmatmul.mubr.bf16.vlgmr.msra.gmra.mrb[8].mxu0 %v3831_v48 }
  0xed   : > { %2836 = vmatmul.mubr.bf16.vlgmr.msra.gmra.mrb[8].mxu1 %v3834_v49  ;;  %2840 = vmatpush3.bf16.msra.mxu0 %v3295_v19  ;;  %v704_v19 = vld [vmem:[#allocation2 + $0x4] sm:$0x1] }
  0xee   : > { %2860 = vmatpush3.bf16.msra.mxu1 %v3296_v20  ;;  %2841 = vmatprep.subr.bf16.mxu0 %v3468_v10  ;;  %v705_v20 = vld [vmem:[#allocation2 + $0x5] sm:$0x1] }
  0xef   : > { %2861 = vmatprep.subr.bf16.mxu1 %v3468_v10  ;;  %2855 = vmatprep.mubr.msk.bf16.mxu0 %vm3469_vm1, %v3468_v10 }
  0xf0   : > { %2875 = vmatprep.mubr.msk.bf16.mxu1 %vm3469_vm1, %v3468_v10 }
  0xf1   : > { %2842 = vmatpush3.bf16.msra.mxu0 %v3297_v21 }
  0xf2   : > { %2862 = vmatpush3.bf16.msra.mxu1 %v3298_v22  ;;  %2843 = vmatprep.subr.bf16.mxu0 %v3468_v10 }
  0xf3   : > { %2863 = vmatprep.subr.bf16.mxu1 %v3468_v10 }
  0xf5   : > { %2844 = vmatpush3.bf16.msra.mxu0 %v3299_v23 }
  0xf6   : > { %2864 = vmatpush3.bf16.msra.mxu1 %v3300_v24  ;;  %2845 = vmatprep.subr.bf16.mxu0 %v3468_v10 }
  0xf7   : > { %2865 = vmatprep.subr.bf16.mxu1 %v3468_v10 }
  0xf9   : > { %2846 = vmatpush3.bf16.msra.mxu0 %v3301_v25 }
  0xfa   : > { %2866 = vmatpush3.bf16.msra.mxu1 %v3302_v26  ;;  %2847 = vmatprep.subr.bf16.mxu0 %v3468_v10 }
  0xfb   : > { %2867 = vmatprep.subr.bf16.mxu1 %v3468_v10 }
  0xfd   : > { %2848 = vmatpush3.bf16.msra.mxu0 %v3303_v27 }
  0xfe   : > { %2868 = vmatpush3.bf16.msra.mxu1 %v3304_v28  ;;  %2849 = vmatprep.subr.bf16.mxu0 %v3468_v10 }
  0xff   : > { %2869 = vmatprep.subr.bf16.mxu1 %v3468_v10 }
 0x101   : > { %2850 = vmatpush3.bf16.msra.mxu0 %v3305_v29 }
 0x102   : > { %2870 = vmatpush3.bf16.msra.mxu1 %v3306_v30  ;;  %2851 = vmatprep.subr.bf16.mxu0 %v3468_v10 }
 0x103   : > { %2871 = vmatprep.subr.bf16.mxu1 %v3468_v10 }
 0x105   : > { %2852 = vmatpush3.bf16.msra.mxu0 %v3307_v31  ;;  %v706_v31 = vld [vmem:[#allocation2 + $0x6] sm:$0x1] }
 0x106   : > { %2872 = vmatpush3.bf16.msra.mxu1 %v3308_v32  ;;  %2853 = vmatprep.subr.bf16.mxu0 %v3468_v10  ;;  %v707_v32 = vld [vmem:[#allocation2 + $0x7] sm:$0x1] }
 0x107   : > { %2873 = vmatprep.subr.bf16.mxu1 %v3468_v10 }
 0x109   : > { %2854 = vmatpush3.bf16.msra.mxu0 %v3309_v33 }
 0x10a   : > { %2874 = vmatpush3.bf16.msra.mxu1 %v3310_v34 }
 0x10c   : > { %2856 = vmatmul.mubr.bf16.vlgmr.msra.gmra.mrb[12].mxu0 %v3860_v63 }
 0x10d   : > { %2876 = vmatmul.mubr.bf16.vlgmr.msra.gmra.mrb[12].mxu1 %v3863_v0 }
 0x120   : > { %v1575_v38 = vpop.xlane.xlu0 %1574 }
 0x121   : > { %v1597_v40 = vadd.f32 %v1575_v38, %v1556_v37 }
 0x123   : > { %1606 = vst.msk [vmem:[#allocation3] sm:$0x1] %vm1605_vm3, %v1597_v40 }
 0x124   : > { %v1578_v43 = vpop.xlane.xlu0 %1577 }
 0x125   : > { %v1581_v36 = vpop.xlane.xlu1 %1580  ;;  %v1598_v45 = vadd.f32 %v1578_v43, %v1557_v42  ;;  %v1746_v43 = vld [vmem:[%s3740_s11] sm:$0xff] (!%p2560_p2)  ;;  %s4203_s11 = sld [smem:[#allocation25_spill]] (!%p2560_p2) }
 0x126   : > { %v1599_v39 = vadd.f32 %v1581_v36, %v1558_v35 }
 0x127   : > { %1607 = vst.msk [vmem:[#allocation3 + $0x1] sm:$0x1] %vm1605_vm3, %v1598_v45 }
 0x128   : > { %1608 = vst.msk [vmem:[#allocation3 + $0x2] sm:$0x1] %vm1605_vm3, %v1599_v39  ;;  %v1587_v50 = vpop.xlane.xlu0 %1586 }
 0x129   : > { %v1584_v10 = vpop.xlane.xlu1 %1583  ;;  %v1601_v51 = vadd.f32 %v1587_v50, %v1560_v47 }
 0x12a   : > { %v1600_v44 = vadd.f32 %v1584_v10, %v1559_v41  ;;  %v1747_v10 = vld [vmem:[%s4196_s4] sm:$0xff] (!%p2560_p2) }
 0x12b   : > { %1610 = vst.msk [vmem:[#allocation3 + $0x4] sm:$0x1] %vm1605_vm3, %v1601_v51 }
 0x12c   : > { %1609 = vst.msk [vmem:[#allocation3 + $0x3] sm:$0x1] %vm1605_vm3, %v1600_v44  ;;  %v1593_v56 = vpop.xlane.xlu0 %1592  ;;  %v3470_v44 = vmov (!%p2560_p2), 0.0  }
 0x12d   : > { %v1590_v48 = vpop.xlane.xlu1 %1589  ;;  %v1603_v57 = vadd.f32 %v1593_v56, %v1562_v55  ;;  %2879 = vmatprep.subr.mxu0 (!%p2560_p2), %v3470_v44  ;;  %2881 = vmatprep.mubr.msk.f32.mxu0 (!%p2560_p2), %vm3471_vm5, %v3470_v44  ;;  %v1829_v56 = vld [vmem:[%s4197_s12] sm:$0xff] (!%p2560_p2) }
 0x12e   : > { %v1602_v49 = vadd.f32 %v1590_v48, %v1561_v46  ;;  %v1618_v46 = vld [vmem:[#allocation3] sm:$0x1] (!%p2560_p2)  ;;  %2880 = vmatpush3.msra.mxu0 (!%p2560_p2), %v1747_v10  ;;  %v3472_v48 = vmov (!%p2560_p2), 0   ;;  %2892 = vmatprep.mubr.msk.f32.mxu1 (!%p2560_p2), %vm3471_vm5, %v3470_v44 }
 0x12f   : > { %1612 = vst.msk [vmem:[#allocation3 + $0x6] sm:$0x1] %vm1605_vm3, %v1603_v57  ;;  %v1620_v45 = vld [vmem:[#allocation3 + $0x2] sm:$0x1] (!%p2560_p2)  ;;  %3312 = vset.pattern.permute.xlu1 (!%p2560_p2), %v3472_v48  ;;  %v1634_v50 = vmax.f32 (!%p2560_p2), %v1618_v46, 1e-09  ;;  %3311 = vset.pattern.permute.xlu0 (!%p2560_p2), %v3472_v48 }
 0x130   : > { %1611 = vst.msk [vmem:[#allocation3 + $0x5] sm:$0x1] %vm1605_vm3, %v1602_v49  ;;  %v1636_v49 = vmax.f32 (!%p2560_p2), %v1620_v45, 1e-09  ;;  %v3474_v45 = vmov (!%p2560_p2), 1966171168  }
 0x131   : > { %v1596_v53 = vpop.xlane.xlu1 %1595  ;;  %v1936_v46 = vunpack.c.l.s4 (!%p2560_p2), %v3474_v45  ;;  %v2069_v45 = vld [vmem:[#allocation7 + $0x48] sm:$0xff] (!%p2560_p2) }
 0x132   : > { %v1604_v54 = vadd.f32 %v1596_v53, %v1563_v52  ;;  %v1619_v52 = vld [vmem:[#allocation3 + $0x1] sm:$0x1] (!%p2560_p2)  ;;  %3313 = vrcp.f32 (!%p2560_p2), %v1636_v49  ;;  %v1622_v55 = vld [vmem:[#allocation3 + $0x4] sm:$0x1] (!%p2560_p2) }
 0x133   : > { %v1621_v47 = vld [vmem:[#allocation3 + $0x3] sm:$0x1] (!%p2560_p2)  ;;  %3315 = vrcp.f32 (!%p2560_p2), %v1634_v50 }
 0x134   : > { %1613 = vst.msk [vmem:[#allocation3 + $0x7] sm:$0x1] %vm1605_vm3, %v1604_v54  ;;  %v1637_v51 = vmax.f32 (!%p2560_p2), %v1621_v47, 1e-09  ;;  %v1635_v54 = vmax.f32 (!%p2560_p2), %v1619_v52, 1e-09 }
 0x136   : > { %3317 = vrcp.f32 (!%p2560_p2), %v1637_v51 }
 0x137   : > { %v1623_v53 = vld [vmem:[#allocation3 + $0x5] sm:$0x1] (!%p2560_p2)  ;;  %3319 = vrcp.f32 (!%p2560_p2), %v1635_v54 }
 0x138   : > { %v1639_v57 = vmax.f32 (!%p2560_p2), %v1623_v53, 1e-09 }
 0x13a   : > { %3321 = vrcp.f32 (!%p2560_p2), %v1639_v57 }
 0x17f   : > { %v918_v60 = vpop.f32.mrb[0].mxu0 }
 0x180   : > { %v1540_v61 = vadd.f32 %v918_v60, %v700_v58  ;;  %v1006_v62 = vpop.f32.mrb[0].mxu1  ;;  %v2737_v63 = vpop.f32.mrb[1].mxu0  ;;  %2882 = vmatmul.mubr.msk.f32.vlgmr.msra.gmra.mrb[0].mxu0 (!%p2560_p2), %vm1755_vm4, %v1746_v43  ;;  %v3473_v58 = vmov (!%p2560_p2), 0.0|0.0   ;;  %v1831_v60 = vld [vmem:[%s4197_s12 + $0x10] sm:$0xff] (!%p2560_p2) }
 0x181   : > { %v1541_v0 = vadd.f32 %v1006_v62, %v701_v59  ;;  %v2757_v1 = vpop.f32.mrb[1].mxu1  ;;  %v921_v2 = vpop.f32.mrb[2].mxu0  ;;  %2927 = vmatprep.mubr.msk.f32.mxu0 (!%p2560_p2), %vm3471_vm5, %v3470_v44  ;;  %3041 = vmatprep.subr.bf16.mxu0 (!%p2560_p2), %v3473_v58  ;;  %v1830_v59 = vld [vmem:[%s4197_s12 + $0x8] sm:$0xff] (!%p2560_p2) }
 0x182   : > { %1548 = vst [vmem:[#allocation2] sm:$0x1] %v1540_v61  ;;  %v1009_v3 = vpop.f32.mrb[2].mxu1  ;;  %v2738_v4 = vpop.f32.mrb[3].mxu0  ;;  %3035 = vmatprep.subr.bf16.mxu1 (!%p2560_p2), %v3473_v58  ;;  %v1638_v61 = vmax.f32 (!%p2560_p2), %v1622_v55, 1e-09  ;;  %v3042_v63 = vpack.c.bf16 (!%p2560_p2), %v1830_v59, %v1829_v56  ;;  %v1937_v56 = vunpack.c.0.s8 (!%p2560_p2), %v1936_v46 }
 0x183   : > { %1549 = vst [vmem:[#allocation2 + $0x1] sm:$0x1] %v1541_v0  ;;  %v2758_v5 = vpop.f32.mrb[3].mxu1  ;;  %v1625_v62 = vld [vmem:[#allocation3 + $0x7] sm:$0x1] (!%p2560_p2)  ;;  %v1832_v0 = vld [vmem:[%s4197_s12 + $0x18] sm:$0xff] (!%p2560_p2) }
 0x184   : > { %v1624_v1 = vld [vmem:[#allocation3 + $0x6] sm:$0x1] (!%p2560_p2)  ;;  %3043 = vmatpush3.bf16.msra.mxu0 (!%p2560_p2), %v3042_v63  ;;  %v3045_v2 = vpack.c.bf16 (!%p2560_p2), %v1832_v0, %v1831_v60  ;;  %v1641_v3 = vmax.f32 (!%p2560_p2), %v1625_v62, 1e-09  ;;  %3323 = vrcp.f32 (!%p2560_p2), %v1638_v61  ;;  %v3314_v5 = vpop.eup (!%p2560_p2), %3313 }
 0x185   : > { %3044 = vmatprep.subr.bf16.mxu0 (!%p2560_p2), %v3473_v58  ;;  %v1640_v4 = vmax.f32 (!%p2560_p2), %v1624_v1, 1e-09  ;;  %1686 = vperm.xlu1 (!%p2560_p2), %3312, %v3314_v5  }
 0x186   : > { %3325 = vrcp.f32 (!%p2560_p2), %v1641_v3 }
 0x187   : > { %3327 = vrcp.f32 (!%p2560_p2), %v1640_v4 }
 0x188   : > { %3046 = vmatpush3.bf16.msra.mxu0 (!%p2560_p2), %v3045_v2 }
 0x189   : > { %3047 = vmatprep.subr.bf16.mxu0 (!%p2560_p2), %v3473_v58  ;;  %v1650_v48 = vld [vmem:[#allocation2] sm:$0x1] (!%p2560_p2) }
 0x18a   : > { %v1651_v52 = vld [vmem:[#allocation2 + $0x1] sm:$0x1] (!%p2560_p2) }
 0x19f   : > { %v1094_v8 = vpop.f32.mrb[4].mxu0 }
 0x1a0   : > { %v1542_v9 = vadd.f32 %v1094_v8, %v702_v6  ;;  %v1182_v11 = vpop.f32.mrb[4].mxu1  ;;  %v2777_v12 = vpop.f32.mrb[5].mxu0 }
 0x1a1   : > { %v1543_v13 = vadd.f32 %v1182_v11, %v703_v7  ;;  %v2797_v14 = vpop.f32.mrb[5].mxu1  ;;  %v1097_v15 = vpop.f32.mrb[6].mxu0  ;;  %v1834_v11 = vld [vmem:[%s4197_s12 + $0x28] sm:$0xff] (!%p2560_p2) }
 0x1a2   : > { %1550 = vst [vmem:[#allocation2 + $0x2] sm:$0x1] %v1542_v9  ;;  %v1185_v16 = vpop.f32.mrb[6].mxu1  ;;  %v2778_v17 = vpop.f32.mrb[7].mxu0  ;;  %v1833_v9 = vld [vmem:[%s4197_s12 + $0x20] sm:$0xff] (!%p2560_p2) }
 0x1a3   : > { %1551 = vst [vmem:[#allocation2 + $0x3] sm:$0x1] %v1543_v13  ;;  %v2798_v18 = vpop.f32.mrb[7].mxu1  ;;  %v3316_v6 = vpop.eup (!%p2560_p2), %3315  ;;  %v3048_v12 = vpack.c.bf16 (!%p2560_p2), %v1834_v11, %v1833_v9  ;;  %v1835_v17 = vld [vmem:[%s4197_s12 + $0x30] sm:$0xff] (!%p2560_p2) }
 0x1a4   : > { %v3318_v7 = vpop.eup (!%p2560_p2), %3317  ;;  %1668 = vperm.xlu0 (!%p2560_p2), %3311, %v3316_v6   ;;  %v1836_v18 = vld [vmem:[%s4197_s12 + $0x38] sm:$0xff] (!%p2560_p2) }
 0x1a5   : > { %v3320_v8 = vpop.eup (!%p2560_p2), %3319  ;;  %1695 = vperm.xlu1 (!%p2560_p2), %3312, %v3318_v7   ;;  %3049 = vmatpush3.bf16.msra.mxu0 (!%p2560_p2), %v3048_v12 }
 0x1a6   : > { %v3322_v13 = vpop.eup (!%p2560_p2), %3321  ;;  %3050 = vmatprep.subr.bf16.mxu0 (!%p2560_p2), %v3473_v58 }
 0x1a7   : > { %v3324_v14 = vpop.eup (!%p2560_p2), %3323 }
 0x1a8   : > { %1677 = vperm.xlu0 (!%p2560_p2), %3311, %v3320_v8   ;;  %v3326_v15 = vpop.eup (!%p2560_p2), %3325 }
 0x1a9   : > { %1713 = vperm.xlu1 (!%p2560_p2), %3312, %v3322_v13   ;;  %v3328_v16 = vpop.eup (!%p2560_p2), %3327  ;;  %v1652_v47 = vld [vmem:[#allocation2 + $0x2] sm:$0x1] (!%p2560_p2) }
 0x1aa   : > { %v1653_v49 = vld [vmem:[#allocation2 + $0x3] sm:$0x1] (!%p2560_p2) }
 0x1ac   : > { %1704 = vperm.xlu0 (!%p2560_p2), %3311, %v3324_v14  }
 0x1ad   : > { %1731 = vperm.xlu1 (!%p2560_p2), %3312, %v3326_v15  }
 0x1b0   : > { %1722 = vperm.xlu0 (!%p2560_p2), %3311, %v3328_v16  }
 0x1bf   : > { %v1270_v21 = vpop.f32.mrb[8].mxu0 }
 0x1c0   : > { %v1544_v22 = vadd.f32 %v1270_v21, %v704_v19  ;;  %v1358_v23 = vpop.f32.mrb[8].mxu1  ;;  %v2817_v24 = vpop.f32.mrb[9].mxu0  ;;  %v3051_v19 = vpack.c.bf16 (!%p2560_p2), %v1836_v18, %v1835_v17  ;;  %v1838_v21 = vld [vmem:[%s4197_s12 + $0x48] sm:$0xff] (!%p2560_p2) }
 0x1c1   : > { %v1545_v25 = vadd.f32 %v1358_v23, %v705_v20  ;;  %v2837_v26 = vpop.f32.mrb[9].mxu1  ;;  %v1273_v27 = vpop.f32.mrb[10].mxu0  ;;  %v1837_v20 = vld [vmem:[%s4197_s12 + $0x40] sm:$0xff] (!%p2560_p2)  ;;  %v1839_v23 = vld [vmem:[%s4197_s12 + $0x50] sm:$0xff] (!%p2560_p2)  ;;  %v1840_v24 = vld [vmem:[%s4197_s12 + $0x58] sm:$0xff] (!%p2560_p2) }
 0x1c2   : > { %1552 = vst [vmem:[#allocation2 + $0x4] sm:$0x1] %v1544_v22  ;;  %v1361_v28 = vpop.f32.mrb[10].mxu1  ;;  %v2818_v29 = vpop.f32.mrb[11].mxu0  ;;  %3052 = vmatpush3.bf16.msra.mxu0 (!%p2560_p2), %v3051_v19  ;;  %v3054_v22 = vpack.c.bf16 (!%p2560_p2), %v1838_v21, %v1837_v20  ;;  %v3057_v26 = vpack.c.bf16 (!%p2560_p2), %v1840_v24, %v1839_v23  ;;  %v1842_v27 = vld [vmem:[%s4197_s12 + $0x68] sm:$0xff] (!%p2560_p2) }
 0x1c3   : > { %1553 = vst [vmem:[#allocation2 + $0x5] sm:$0x1] %v1545_v25  ;;  %v2838_v30 = vpop.f32.mrb[11].mxu1  ;;  %3053 = vmatprep.subr.bf16.mxu0 (!%p2560_p2), %v3473_v58  ;;  %v1841_v25 = vld [vmem:[%s4197_s12 + $0x60] sm:$0xff] (!%p2560_p2)  ;;  %v1843_v29 = vld [vmem:[%s4197_s12 + $0x70] sm:$0xff] (!%p2560_p2) }
 0x1c4   : > { %v3060_v28 = vpack.c.bf16 (!%p2560_p2), %v1842_v27, %v1841_v25  ;;  %v1844_v30 = vld [vmem:[%s4197_s12 + $0x78] sm:$0xff] (!%p2560_p2) }
 0x1c6   : > { %3055 = vmatpush3.bf16.msra.mxu0 (!%p2560_p2), %v3054_v22 }
 0x1c7   : > { %3056 = vmatprep.subr.bf16.mxu0 (!%p2560_p2), %v3473_v58 }
 0x1c9   : > { %v1654_v0 = vld [vmem:[#allocation2 + $0x4] sm:$0x1] (!%p2560_p2) }
 0x1ca   : > { %3058 = vmatpush3.bf16.msra.mxu0 (!%p2560_p2), %v3057_v26  ;;  %v1655_v61 = vld [vmem:[#allocation2 + $0x5] sm:$0x1] (!%p2560_p2) }
 0x1cb   : > { %3059 = vmatprep.subr.bf16.mxu0 (!%p2560_p2), %v3473_v58 }
 0x1ce   : > { %3061 = vmatpush3.bf16.msra.mxu0 (!%p2560_p2), %v3060_v28  ;;  %v2060_v28 = vld [vmem:[#allocation7] sm:$0xff] (!%p2560_p2) }
 0x1cf   : > { %3062 = vmatprep.subr.bf16.mxu0 (!%p2560_p2), %v3473_v58 }
 0x1dd   : > { %1617 = sbr.rel (%p2560_p2) target bundleno = 1463 (0x5b7), region = 137 }
 0x1df   : > { %v1446_v33 = vpop.f32.mrb[12].mxu0 }
 0x1e0   : > { %v1534_v34 = vpop.f32.mrb[12].mxu1  ;;  %v1546_v35 = vadd.f32 %v1446_v33, %v706_v31  ;;  %v2857_v36 = vpop.f32.mrb[13].mxu0  ;;  %v1845_v31 = vld [vmem:[%s4198_s9] sm:$0xff] (!%p2560_p2)  ;;  %v3063_v33 = vpack.c.bf16 (!%p2560_p2), %v1844_v30, %v1843_v29  ;;  %v2061_v29 = vld [vmem:[#allocation7 + $0x8] sm:$0xff] (!%p2560_p2) }
 0x1e1   : > { %v1547_v37 = vadd.f32 %v1534_v34, %v707_v32  ;;  %v2877_v38 = vpop.f32.mrb[13].mxu1  ;;  %v1449_v39 = vpop.f32.mrb[14].mxu0  ;;  %v1846_v32 = vld [vmem:[%s4198_s9 + $0x8] sm:$0xff] (!%p2560_p2)  ;;  %v1848_v36 = vld [vmem:[%s4198_s9 + $0x18] sm:$0xff] (!%p2560_p2)  ;;  %v2561_v30 = vld [vmem:[%s4199_s6] ss:$0 sm:$0xff] (!%p2560_p2) }
 0x1e2   : > { %1554 = vst [vmem:[#allocation2 + $0x6] sm:$0x1] %v1546_v35  ;;  %v1537_v40 = vpop.f32.mrb[14].mxu1  ;;  %v2858_v41 = vpop.f32.mrb[15].mxu0  ;;  %v3036_v34 = vpack.c.bf16 (!%p2560_p2), %v1846_v32, %v1845_v31  ;;  %3064 = vmatpush3.bf16.msra.mxu0 (!%p2560_p2), %v3063_v33  ;;  %v1847_v35 = vld [vmem:[%s4198_s9 + $0x10] sm:$0xff] (!%p2560_p2)  ;;  %v1671_v38 = vlaneseq (!%p2560_p2)  ;;  %v3066_v32 = vpack.c.bf16 (!%p2560_p2), %v2061_v29, %v2060_v28  ;;  %s4202_s6 = sld [smem:[#allocation24_spill]] (!%p2560_p2) }
 0x1e3   : > { %1555 = vst [vmem:[#allocation2 + $0x7] sm:$0x1] %v1547_v37  ;;  %v2878_v42 = vpop.f32.mrb[15].mxu1  ;;  %3089 = vmatprep.subr.bf16.mxu0 (!%p2560_p2), %v3473_v58  ;;  %v3039_v37 = vpack.c.bf16 (!%p2560_p2), %v1848_v36, %v1847_v35  ;;  %v2062_v35 = vld [vmem:[#allocation7 + $0x10] sm:$0xff] (!%p2560_p2)  ;;  %v2063_v36 = vld [vmem:[#allocation7 + $0x18] sm:$0xff] (!%p2560_p2) }
 0x1e4   : > { %3037 = vmatpush3.bf16.msra.mxu1 %v3036_v34  ;;  %v1672_v39 = vshrl.u32 %v1671_v38, 7  ;;  %v2064_v38 = vld [vmem:[#allocation7 + $0x20] sm:$0xff]  ;;  %v2250_v28 = vld [vmem:[%s4201_s25 + $0x10] sm:$0xff] }
 0x1e5   : > { %3038 = vmatprep.subr.bf16.mxu1 %v3473_v58 }
 0x1e6   : > { %v1673_v40 = vsub.s32 0, %v1672_v39  ;;  %v1940_v2 = vsub.s32 %v1937_v56, %v1672_v39  ;;  %v2065_v39 = vld [vmem:[#allocation7 + $0x28] sm:$0xff]  ;;  %v2154_v56 = vld [vmem:[#allocation9] sm:$0xff] }
 0x1e8   : > { %3040 = vmatpush3.bf16.msra.mxu1 %v3039_v37  ;;  %v3069_v37 = vpack.c.bf16 %v2063_v36, %v2062_v35  ;;  %v2255_v35 = vld [vmem:[%s4201_s25 + $0x38] sm:$0xff] }
 0x1e9   : > { %3065 = vmatprep.subr.bf16.mxu1 %v3473_v58  ;;  %v1656_v12 = vld [vmem:[#allocation2 + $0x6] sm:$0x1] }
 0x1ea   : > { %v1657_v8 = vld [vmem:[#allocation2 + $0x7] sm:$0x1] }
 0x204   : > { %v1687_v41 = vpop.permute.xlu1 %1686 }
 0x205   : > { %v1692_v10 = vrot.slane %v1687_v41, %v1673_v40  ;;  %v2066_v41 = vld [vmem:[#allocation7 + $0x30] sm:$0xff] }
 0x207   : > { %v1740_v54 = vmul.f32 %v1692_v10, %v1652_v47  ;;  %v2068_v10 = vld [vmem:[#allocation7 + $0x40] sm:$0xff]  ;;  %v2070_v47 = vld [vmem:[#allocation7 + $0x50] sm:$0xff] }
 0x208   : > { %v3078_v46 = vpack.c.bf16 %v2069_v45, %v2068_v10  ;;  %v2260_v10 = vld [vmem:[%s4201_s25 + $0x60] sm:$0xff] }
 0x223   : > { %v1669_v42 = vpop.permute.xlu0 %1668 }
 0x224   : > { %v1674_v43 = vrot.slane %v1669_v42, %v1673_v40  ;;  %v1696_v50 = vpop.permute.xlu1 %1695  ;;  %v2067_v42 = vld [vmem:[#allocation7 + $0x38] sm:$0xff] }
 0x225   : > { %v1701_v51 = vrot.slane %v1696_v50, %v1673_v40  ;;  %v2072_v50 = vld [vmem:[#allocation7 + $0x60] sm:$0xff] }
 0x226   : > { %v1738_v55 = vmul.f32 %v1674_v43, %v1650_v48  ;;  %v3075_v43 = vpack.c.bf16 %v2067_v42, %v2066_v41  ;;  %v2071_v48 = vld [vmem:[#allocation7 + $0x58] sm:$0xff] }
 0x227   : > { %v1678_v53 = vpop.permute.xlu0 %1677  ;;  %v1741_v59 = vmul.f32 %v1701_v51, %v1653_v49  ;;  %v3081_v49 = vpack.c.bf16 %v2071_v48, %v2070_v47  ;;  %v2073_v51 = vld [vmem:[#allocation7 + $0x68] sm:$0xff]  ;;  %v2259_v41 = vld [vmem:[%s4201_s25 + $0x58] sm:$0xff] }
 0x228   : > { %v1683_v57 = vrot.slane %v1678_v53, %v1673_v40  ;;  %v1714_v62 = vpop.permute.xlu1 %1713  ;;  %v2074_v53 = vld [vmem:[#allocation7 + $0x70] sm:$0xff] }
 0x229   : > { %v1719_v63 = vrot.slane %v1714_v62, %v1673_v40  ;;  %v1932_v3 = vcombine.low %v1740_v54, %v1741_v59  ;;  %v2075_v54 = vld [vmem:[#allocation7 + $0x78] sm:$0xff]  ;;  %v2156_v59 = vld [vmem:[#allocation9 + $0x10] sm:$0xff] }
 0x22a   : > { %v1739_v60 = vmul.f32 %v1683_v57, %v1651_v52  ;;  %v3084_v52 = vpack.c.bf16 %v2073_v51, %v2072_v50  ;;  %v2155_v57 = vld [vmem:[#allocation9 + $0x8] sm:$0xff]  ;;  %v2262_v51 = vld [vmem:[%s4201_s25 + $0x70] sm:$0xff] }
 0x22b   : > { %v1705_v1 = vpop.permute.xlu0 %1704  ;;  %v1743_v6 = vmul.f32 %v1719_v63, %v1655_v61  ;;  %v1948_v14 = vrot.slane %v1932_v3, %v1940_v2  ;;  %v2157_v61 = vld [vmem:[#allocation9 + $0x18] sm:$0xff]  ;;  %v2158_v63 = vld [vmem:[#allocation9 + $0x20] sm:$0xff] }
 0x22c   : > { %v1931_v4 = vcombine.low %v1738_v55, %v1739_v60  ;;  %v1710_v5 = vrot.slane %v1705_v1, %v1673_v40  ;;  %v1732_v9 = vpop.permute.xlu1 %1731  ;;  %v3087_v55 = vpack.c.bf16 %v2075_v54, %v2074_v53  ;;  %v3090_v60 = vpack.c.bf16 %v2155_v57, %v2154_v56  ;;  %v2161_v3 = vld [vmem:[#allocation9 + $0x38] sm:$0xff] }
 0x22d   : > { %v1737_v11 = vrot.slane %v1732_v9, %v1673_v40  ;;  %v3093_v62 = vpack.c.bf16 %v2157_v61, %v2156_v59  ;;  %v2165_v9 = vld [vmem:[#allocation9 + $0x58] sm:$0xff]  ;;  %v2567_v59 = vld [vmem:[%s4204_s27] ss:$0 sm:$0xff] }
 0x22e   : > { %v1742_v7 = vmul.f32 %v1710_v5, %v1654_v0  ;;  %v1941_v15 = vrot.slane %v1931_v4, %v1940_v2  ;;  %v2159_v0 = vld [vmem:[#allocation9 + $0x28] sm:$0xff]  ;;  %v2162_v5 = vld [vmem:[#allocation9 + $0x40] sm:$0xff] }
 0x22f   : > { %v1723_v13 = vpop.permute.xlu0 %1722  ;;  %v1745_v18 = vmul.f32 %v1737_v11, %v1657_v8  ;;  %v3096_v1 = vpack.c.bf16 %v2159_v0, %v2158_v63  ;;  %v2164_v8 = vld [vmem:[#allocation9 + $0x50] sm:$0xff] }
 0x230   : > { %v1933_v16 = vcombine.low %v1742_v7, %v1743_v6  ;;  %v1728_v17 = vrot.slane %v1723_v13, %v1673_v40  ;;  %v1963_v20 = vcombine.low %v1941_v15, %v1948_v14  ;;  %v3072_v40 = vpack.c.bf16 %v2065_v39, %v2064_v38  ;;  %v2163_v6 = vld [vmem:[#allocation9 + $0x48] sm:$0xff] }
 0x231   : > { %v3102_v7 = vpack.c.bf16 %v2163_v6, %v2162_v5  ;;  %v3105_v11 = vpack.c.bf16 %v2165_v9, %v2164_v8  ;;  %v2167_v13 = vld [vmem:[#allocation9 + $0x68] sm:$0xff] }
 0x232   : > { %v1744_v19 = vmul.f32 %v1728_v17, %v1656_v12  ;;  %v1955_v21 = vrot.slane %v1933_v16, %v1940_v2  ;;  %v1971_v25 = vrot.slane %v1963_v20, %v1940_v2  ;;  %v2166_v12 = vld [vmem:[#allocation9 + $0x60] sm:$0xff]  ;;  %v2257_v38 = vld [vmem:[%s4201_s25 + $0x48] sm:$0xff] }
 0x233   : > { %v3108_v14 = vpack.c.bf16 %v2167_v13, %v2166_v12 }
 0x234   : > { %v1934_v22 = vcombine.low %v1744_v19, %v1745_v18  ;;  %v2564_v18 = vld [vmem:[%s4200_s0] ss:$0 sm:$0xff] }
 0x236   : > { %v1962_v23 = vrot.slane %v1934_v22, %v1940_v2 }
 0x238   : > { %v1964_v24 = vcombine.low %v1955_v21, %v1962_v23  ;;  %v2168_v23 = vld [vmem:[#allocation9 + $0x70] sm:$0xff] }
 0x23a   : > { %v1978_v26 = vrot.slane %v1964_v24, %v1940_v2  ;;  %v2160_v2 = vld [vmem:[#allocation9 + $0x30] sm:$0xff]  ;;  %v2169_v24 = vld [vmem:[#allocation9 + $0x78] sm:$0xff] }
 0x23b   : > { %v3099_v4 = vpack.c.bf16 %v2161_v3, %v2160_v2 }
 0x23c   : > { %v1979_v27 = vcombine.low %v1971_v25, %v1978_v26  ;;  %v3111_v25 = vpack.c.bf16 %v2169_v24, %v2168_v23  ;;  %v2248_v26 = vld [vmem:[%s4201_s25] sm:$0xff] }
 0x23e   : > { %2928 = vmatmul.mubr.f32.vlgmr.msra.gmra.mrb[2].mxu0 %v1979_v27  ;;  %v2249_v27 = vld [vmem:[%s4201_s25 + $0x8] sm:$0xff] }
 0x23f   : > { %2997 = vmatprep.mubr.msk.f32.mxu0 %vm3471_vm5, %v3470_v44  ;;  %3091 = vmatpush3.bf16.msra.mxu0 %v3090_v60  ;;  %v3114_v29 = vpack.c.bf16 %v2249_v27, %v2248_v26 }
 0x240   : > { %3092 = vmatprep.subr.bf16.mxu0 %v3473_v58 }
 0x243   : > { %3094 = vmatpush3.bf16.msra.mxu0 %v3093_v62 }
 0x244   : > { %3095 = vmatprep.subr.bf16.mxu0 %v3473_v58 }
 0x247   : > { %3097 = vmatpush3.bf16.msra.mxu0 %v3096_v1 }
 0x248   : > { %3098 = vmatprep.subr.bf16.mxu0 %v3473_v58 }
 0x24b   : > { %3100 = vmatpush3.bf16.msra.mxu0 %v3099_v4 }
 0x24c   : > { %3101 = vmatprep.subr.bf16.mxu0 %v3473_v58 }
 0x24f   : > { %3103 = vmatpush3.bf16.msra.mxu0 %v3102_v7 }
 0x250   : > { %3104 = vmatprep.subr.bf16.mxu0 %v3473_v58 }
 0x253   : > { %v1825_v31 = vpop.f32.mrb[0].mxu0  ;;  %3106 = vmatpush3.bf16.msra.mxu0 %v3105_v11 }
 0x254   : > { %v1826_v33 = vadd.f32 %v2561_v30, %v1825_v31  ;;  %v2883_v34 = vpop.f32.mrb[1].mxu0  ;;  %3107 = vmatprep.subr.bf16.mxu0 %v3473_v58  ;;  %v2252_v31 = vld [vmem:[%s4201_s25 + $0x20] sm:$0xff] }
 0x255   : > { %v2254_v34 = vld [vmem:[%s4201_s25 + $0x30] sm:$0xff] }
 0x256   : > { %2893 = vmatmul.mubr.msk.f32.vlgmr.msra.gmra.mrb[0].mxu1 %vm1849_vm6, %v1826_v33  ;;  %v3123_v36 = vpack.c.bf16 %v2255_v35, %v2254_v34 }
 0x257   : > { %3067 = vmatpush3.bf16.msra.mxu1 %v3066_v32  ;;  %2962 = vmatprep.mubr.msk.f32.mxu1 %vm3471_vm5, %v3470_v44  ;;  %v2253_v32 = vld [vmem:[%s4201_s25 + $0x28] sm:$0xff] }
 0x258   : > { %3068 = vmatprep.subr.bf16.mxu1 %v3473_v58  ;;  %3109 = vmatpush3.bf16.msra.mxu0 %v3108_v14  ;;  %v3120_v33 = vpack.c.bf16 %v2253_v32, %v2252_v31 }
 0x259   : > { %3110 = vmatprep.subr.bf16.mxu0 %v3473_v58 }
 0x25b   : > { %3070 = vmatpush3.bf16.msra.mxu1 %v3069_v37  ;;  %v2256_v37 = vld [vmem:[%s4201_s25 + $0x40] sm:$0xff] }
 0x25c   : > { %3071 = vmatprep.subr.bf16.mxu1 %v3473_v58  ;;  %3112 = vmatpush3.bf16.msra.mxu0 %v3111_v25  ;;  %v3126_v39 = vpack.c.bf16 %v2257_v38, %v2256_v37 }
 0x25f   : > { %3073 = vmatpush3.bf16.msra.mxu1 %v3072_v40  ;;  %v2258_v40 = vld [vmem:[%s4201_s25 + $0x50] sm:$0xff] }
 0x260   : > { %3074 = vmatprep.subr.bf16.mxu1 %v3473_v58  ;;  %v3129_v42 = vpack.c.bf16 %v2259_v41, %v2258_v40 }
 0x263   : > { %3076 = vmatpush3.bf16.msra.mxu1 %v3075_v43  ;;  %v2261_v43 = vld [vmem:[%s4201_s25 + $0x68] sm:$0xff] }
 0x264   : > { %3077 = vmatprep.subr.bf16.mxu1 %v3473_v58  ;;  %v3132_v45 = vpack.c.bf16 %v2261_v43, %v2260_v10 }
 0x267   : > { %3079 = vmatpush3.bf16.msra.mxu1 %v3078_v46  ;;  %v2565_v46 = vld [vmem:[%s4202_s6] ss:$0 sm:$0xff] }
 0x268   : > { %3080 = vmatprep.subr.bf16.mxu1 %v3473_v58 }
 0x26b   : > { %3082 = vmatpush3.bf16.msra.mxu1 %v3081_v49 }
 0x26c   : > { %3083 = vmatprep.subr.bf16.mxu1 %v3473_v58 }
 0x26f   : > { %3085 = vmatpush3.bf16.msra.mxu1 %v3084_v52  ;;  %v2263_v52 = vld [vmem:[%s4201_s25 + $0x78] sm:$0xff] }
 0x270   : > { %3086 = vmatprep.subr.bf16.mxu1 %v3473_v58  ;;  %v3135_v53 = vpack.c.bf16 %v2263_v52, %v2262_v51 }
 0x273   : > { %3088 = vmatpush3.bf16.msra.mxu1 %v3087_v55 }
 0x274   : > { %3113 = vmatprep.subr.bf16.mxu1 %v3473_v58 }
 0x311   : > { %v2047_v15 = vpop.f32.mrb[2].mxu0 }
 0x312   : > { %v2929_v16 = vpop.f32.mrb[3].mxu0 }
 0x329   : > { %v1919_v17 = vpop.f32.mrb[0].mxu1 }
 0x32a   : > { %v2048_v19 = vadd.f32 %v2047_v15, %v1919_v17  ;;  %v2894_v20 = vpop.f32.mrb[1].mxu1 }
 0x32c   : > { %v2058_v21 = vadd.f32 %v2564_v18, %v2048_v19 }
 0x32e   : > { %v2059_v22 = vmax.f32 %v2058_v21, 0.0 }
 0x330   : > { %2963 = vmatmul.mubr.f32.vlgmr.msra.gmra.mrb[2].mxu1 %v2059_v22 }
 0x331   : > { %3032 = vmatprep.mubr.msk.f32.mxu1 %vm3471_vm5, %v3470_v44  ;;  %v2251_v44 = vld [vmem:[%s4201_s25 + $0x18] sm:$0xff]  ;;  %3115 = vmatpush3.bf16.msra.mxu1 %v3114_v29 }
 0x332   : > { %v3117_v30 = vpack.c.bf16 %v2251_v44, %v2250_v28  ;;  %3116 = vmatprep.subr.bf16.mxu1 %v3473_v58 }
 0x335   : > { %3118 = vmatpush3.bf16.msra.mxu1 %v3117_v30 }
 0x336   : > { %3119 = vmatprep.subr.bf16.mxu1 %v3473_v58 }
 0x339   : > { %3121 = vmatpush3.bf16.msra.mxu1 %v3120_v33 }
 0x33a   : > { %3122 = vmatprep.subr.bf16.mxu1 %v3473_v58 }
 0x33d   : > { %3124 = vmatpush3.bf16.msra.mxu1 %v3123_v36 }
 0x33e   : > { %3125 = vmatprep.subr.bf16.mxu1 %v3473_v58 }
 0x341   : > { %3127 = vmatpush3.bf16.msra.mxu1 %v3126_v39 }
 0x342   : > { %3128 = vmatprep.subr.bf16.mxu1 %v3473_v58 }
 0x345   : > { %3130 = vmatpush3.bf16.msra.mxu1 %v3129_v42 }
 0x346   : > { %3131 = vmatprep.subr.bf16.mxu1 %v3473_v58 }
 0x349   : > { %3133 = vmatpush3.bf16.msra.mxu1 %v3132_v45 }
 0x34a   : > { %3134 = vmatprep.subr.bf16.mxu1 %v3473_v58  ;;  %v2566_v58 = vld [vmem:[%s4203_s11] ss:$0 sm:$0xff] }
 0x34d   : > { %3136 = vmatpush3.bf16.msra.mxu1 %v3135_v53 }
 0x403   : > { %v2149_v47 = vpop.f32.mrb[2].mxu1 }
 0x404   : > { %v2150_v48 = vadd.f32 %v2565_v46, %v2149_v47  ;;  %v2964_v49 = vpop.f32.mrb[3].mxu1 }
 0x406   : > { %v2153_v50 = vmax.f32 %v2150_v48, 0.0 }
 0x408   : > { %2998 = vmatmul.mubr.f32.vlgmr.msra.gmra.mrb[4].mxu0 %v2153_v50 }
 0x4db   : > { %v2243_v54 = vpop.f32.mrb[4].mxu0 }
 0x4dc   : > { %v2244_v55 = vadd.f32 %v2566_v58, %v2243_v54  ;;  %v2999_v56 = vpop.f32.mrb[5].mxu0 }
 0x4de   : > { %v2247_v57 = vmax.f32 %v2244_v55, 0.0 }
 0x4e0   : > { %3033 = vmatmul.mubr.f32.vlgmr.msra.gmra.mrb[4].mxu1 %v2247_v57 }
 0x5b3   : > { %v2337_v60 = vpop.f32.mrb[4].mxu1 }
 0x5b4   : > { %v2338_v61 = vadd.f32 %v2567_v59, %v2337_v60  ;;  %v3034_v62 = vpop.f32.mrb[5].mxu1 }
 0x5b6   : > { %2342 = vst.msk [vmem:[%s3745_s3] sm:$0xff] %vm2341_vm7, %v2338_v61 }
 0x5b7 PF: > { %s28_s20 = sadd.s32 1, %s3455_s20   ;;  %s4205_s4 = sld [smem:[#allocation17_spill]] }
 0x5b8   : > { %p25_p3 = scmp.ge.s32.totalorder %s28_s20, 6   ;;  %s4206_s13 = sld [smem:[#allocation15_spill]] }
 0x5b9   : > { %s4207_s5 = sld [smem:[#allocation16_spill]]  ;;  %s4208_s29 = smov %s3431_s30 }
 0x5ba   : > { %s4209_s30 = smov %s3435_s15  ;;  %s4211_s16 = smov %s3447_s18 }
 0x5bb   : > { %s4212_s17 = smov %s3451_s19  ;;  %27 = sbr.rel (!%p25_p3) target bundleno = 17 (0x11), region = 189 }
 0x5bd   : > { %s4210_s15 = smov %s4205_s4 }
 0x5be   : > { %s4213_s18 = smov %s4206_s13 }
 0x5bf   : > { %s4214_s19 = smov %s4207_s5 }
 0x5c2   :  { %2362 = vsyncpa [#allocation5], 1 }
 0x5c3   :  { %2364 = vsyncpa [#allocation5 + $0x1], 1 }
 0x5c4   :  { %2365 = vsyncpa [#allocation8], 1 }

</bundles_post_ra>
